<compile_context>
chip_gen: v6e
topology: v6e:2x2x1
jax: 0.10.0
libtpu: 0.0.40
codegen_flags: <defaults>
</compile_context>

<pallas_src>
import functools

import jax
import jax.numpy as jnp
from jax.experimental import pallas as pl
from jax.experimental.pallas import tpu as pltpu


# ----------------------------------------------------------------------------
# helpers
# ----------------------------------------------------------------------------
def _round_up(x, m):
    return ((x + m - 1) // m) * m


def _largest_divisor_leq(n, target):
    t = max(1, min(n, target))
    while n % t != 0:
        t -= 1
    return t


# ----------------------------------------------------------------------------
# Pallas kernels
# ----------------------------------------------------------------------------
def _lstm_layer_kernel(x_ref, wih_ref, b_ref, whh_ref, y_ref,
                       h_ref, c_ref, g_ref, *, hidden_dim, chunk):
    """One time-chunk of one LSTM layer, input projection fused in.

    x_ref   : (Tc, Bc, Din)  layer-input chunk (storage dtype)
    wih_ref : (Din, 4H)      input->gates weights (transposed)
    b_ref   : (1, 4H)        fused bias b_ih + b_hh (f32)
    whh_ref : (H, 4H)        hidden->gates weights (transposed)
    y_ref   : (Tc, Bc, H)    per-timestep hidden output chunk
    h_ref/c_ref : (Bc, H) f32 scratch — carry, persists across time-chunks
    g_ref   : (Tc, Bc, 4H) f32 scratch — projected gates for this chunk
    """
    H = hidden_dim
    Tc = chunk
    Bc = y_ref.shape[1]
    d_in = x_ref.shape[2]

    @pl.when(pl.program_id(1) == 0)
    def _():
        h_ref[...] = jnp.zeros_like(h_ref)
        c_ref[...] = jnp.zeros_like(c_ref)

    # Hoisted per-chunk input projection: one MXU matmul over Tc*Bc rows.
    x_flat = x_ref[...].reshape(Tc * Bc, d_in)
    g_ref[...] = (
        jnp.dot(x_flat, wih_ref[...], preferred_element_type=jnp.float32)
        + b_ref[...]
    ).reshape(Tc, Bc, 4 * H)

    whh = whh_ref[...]                       # loaded once, reused every step

    def step(t, carry):
        h, c = carry
        gates = g_ref[t] + jnp.dot(h.astype(whh.dtype), whh,
                                   preferred_element_type=jnp.float32)
        i_g = jax.nn.sigmoid(gates[:, 0 * H:1 * H])
        f_g = jax.nn.sigmoid(gates[:, 1 * H:2 * H])
        g_g = jnp.tanh(gates[:, 2 * H:3 * H])
        o_g = jax.nn.sigmoid(gates[:, 3 * H:4 * H])
        c_new = f_g * c + i_g * g_g
        h_new = o_g * jnp.tanh(c_new)
        y_ref[t] = h_new.astype(y_ref.dtype)   # lane-dense VMEM store
        return h_new, c_new

    unroll = Tc if Tc <= 8 else 4              # partial unroll: lets the LLO
    h_out, c_out = jax.lax.fori_loop(          # scheduler hide loads/MXU pushes
        0, Tc, step, (h_ref[...], c_ref[...]), unroll=unroll)
    h_ref[...] = h_out
    c_ref[...] = c_out


def _lstm_layer_fc_kernel(x_ref, wih_ref, b_ref, whh_ref, fcw_ref, fcb_ref,
                          o_ref, h_ref, c_ref, g_ref, *, hidden_dim, chunk):
    """Last LSTM layer time-chunk with the final Linear fused in.

    Only the final-timestep hidden state is consumed; o_ref : (Bc, O) is
    written once, on the last time-chunk.
    """
    H = hidden_dim
    Tc = chunk
    Bc = h_ref.shape[0]
    d_in = x_ref.shape[2]

    @pl.when(pl.program_id(1) == 0)
    def _():
        h_ref[...] = jnp.zeros_like(h_ref)
        c_ref[...] = jnp.zeros_like(c_ref)

    x_flat = x_ref[...].reshape(Tc * Bc, d_in)
    g_ref[...] = (
        jnp.dot(x_flat, wih_ref[...], preferred_element_type=jnp.float32)
        + b_ref[...]
    ).reshape(Tc, Bc, 4 * H)

    whh = whh_ref[...]

    def step(t, carry):
        h, c = carry
        gates = g_ref[t] + jnp.dot(h.astype(whh.dtype), whh,
                                   preferred_element_type=jnp.float32)
        i_g = jax.nn.sigmoid(gates[:, 0 * H:1 * H])
        f_g = jax.nn.sigmoid(gates[:, 1 * H:2 * H])
        g_g = jnp.tanh(gates[:, 2 * H:3 * H])
        o_g = jax.nn.sigmoid(gates[:, 3 * H:4 * H])
        c_new = f_g * c + i_g * g_g
        h_new = o_g * jnp.tanh(c_new)
        return h_new, c_new

    unroll = Tc if Tc <= 8 else 4
    h_out, c_out = jax.lax.fori_loop(
        0, Tc, step, (h_ref[...], c_ref[...]), unroll=unroll)
    h_ref[...] = h_out
    c_ref[...] = c_out

    @pl.when(pl.program_id(1) == pl.num_programs(1) - 1)
    def _():
        o_ref[...] = (
            jnp.dot(h_out.astype(fcw_ref.dtype), fcw_ref[...],
                    preferred_element_type=jnp.float32)
            + fcb_ref[...]
        ).astype(o_ref.dtype)


# ----------------------------------------------------------------------------
# pallas_call wrapper (one LSTM layer, optionally with fused final Linear)
# ----------------------------------------------------------------------------
def _lstm_layer(seq, wih_t, bias, whh_t, hidden_pad, *, chunk, batch_shards,
                out_dtype, fc=None):
    T, B, Din = seq.shape
    Hp = hidden_pad
    G4 = 4 * Hp
    Tc = chunk
    n_t = T // Tc
    Bc = B // batch_shards

    in_specs = [
        pl.BlockSpec((Tc, Bc, Din), lambda b, t: (t, b, 0)),   # streamed input
        pl.BlockSpec((Din, G4), lambda b, t: (0, 0)),          # resident weights
        pl.BlockSpec((1, G4), lambda b, t: (0, 0)),
        pl.BlockSpec((Hp, G4), lambda b, t: (0, 0)),
    ]
    scratch = [
        pltpu.VMEM((Bc, Hp), jnp.float32),       # h carry (persists over chunks)
        pltpu.VMEM((Bc, Hp), jnp.float32),       # c carry
        pltpu.VMEM((Tc, Bc, G4), jnp.float32),   # projected gates for the chunk
    ]

    item_in = jnp.dtype(seq.dtype).itemsize
    w_bytes = wih_t.nbytes + whh_t.nbytes + bias.nbytes

    if fc is None:
        kernel = functools.partial(_lstm_layer_kernel, hidden_dim=Hp, chunk=Tc)
        out_shape = jax.ShapeDtypeStruct((T, B, Hp), out_dtype)
        out_spec = pl.BlockSpec((Tc, Bc, Hp), lambda b, t: (t, b, 0))
        y_bytes = Tc * Bc * Hp * jnp.dtype(out_dtype).itemsize
        args = (seq, wih_t, bias, whh_t)
    else:
        fcw_t, fcb = fc
        O = fcw_t.shape[1]
        kernel = functools.partial(_lstm_layer_fc_kernel, hidden_dim=Hp, chunk=Tc)
        out_shape = jax.ShapeDtypeStruct((B, O), out_dtype)
        out_spec = pl.BlockSpec((Bc, O), lambda b, t: (b, 0))
        in_specs += [
            pl.BlockSpec((Hp, O), lambda b, t: (0, 0)),
            pl.BlockSpec((1, O), lambda b, t: (0, 0)),
        ]
        y_bytes = Bc * O * jnp.dtype(out_dtype).itemsize
        w_bytes += fcw_t.nbytes + fcb.nbytes
        args = (seq, wih_t, bias, whh_t, fcw_t, fcb)

    # Size the scoped-VMEM budget from the actual footprint (double-buffered
    # streamed blocks + resident weights + scratch) with headroom.
    x_bytes = Tc * Bc * Din * item_in
    scratch_bytes = (2 * Bc * Hp + Tc * Bc * G4) * 4
    vmem_limit = int(2 * (x_bytes + y_bytes) + 2 * w_bytes + scratch_bytes
                     + (8 << 20))
    vmem_limit = max(16 << 20, min(vmem_limit, 100 << 20))

    return pl.pallas_call(
        kernel,
        out_shape=out_shape,
        grid=(batch_shards, n_t),
        in_specs=in_specs,
        out_specs=out_spec,
        scratch_shapes=scratch,
        compiler_params=pltpu.CompilerParams(
            # batch shards are independent (v7x: sharded across 2 TensorCores);
            # time chunks carry h/c -> sequential.
            dimension_semantics=("parallel", "arbitrary"),
            vmem_limit_bytes=vmem_limit),
    )(*args)


# ----------------------------------------------------------------------------
# One-time parameter preparation (hoisted off the forward critical path)
# ----------------------------------------------------------------------------
def prepare_params(params, storage_dtype=jnp.float32):
    """Transpose weights, fuse biases, pad H to 128 lanes, cast to storage_dtype.

    Padding is inert: padded gate rows (and padded hidden columns) are zero, so
    the padded hidden/cell state stays exactly 0 at every timestep.
    """
    H = params["hidden_dim"]
    L = params["layer_dim"]
    Hp = _round_up(H, 128)
    prep = {"hidden_dim": H, "hidden_pad": Hp, "layer_dim": L,
            "storage_dtype": storage_dtype}

    def pad_gate_rows(w):   # (4H, X) -> (4Hp, X), each torch gate block padded
        blocks = [w[k * H:(k + 1) * H] for k in range(4)]
        return jnp.concatenate(
            [jnp.pad(blk, ((0, Hp - H), (0, 0))) for blk in blocks], axis=0)

    for l in range(L):
        w_ih = jnp.asarray(params[f"weight_ih_l{l}"], jnp.float32)   # (4H, Din)
        w_hh = jnp.asarray(params[f"weight_hh_l{l}"], jnp.float32)   # (4H, H)
        b = (jnp.asarray(params[f"bias_ih_l{l}"], jnp.float32)
             + jnp.asarray(params[f"bias_hh_l{l}"], jnp.float32))    # (4H,)

        w_ih_p = pad_gate_rows(w_ih)                                  # (4Hp, Din)
        if l > 0:  # hidden inputs of layers > 0 are H-padded
            w_ih_p = jnp.pad(w_ih_p, ((0, 0), (0, Hp - H)))           # (4Hp, Hp)
        w_hh_p = jnp.pad(pad_gate_rows(w_hh), ((0, 0), (0, Hp - H)))  # (4Hp, Hp)
        b_p = pad_gate_rows(b[:, None])[:, 0]                         # (4Hp,)

        prep[f"wih_t_l{l}"] = w_ih_p.T.astype(storage_dtype)          # (Din, 4Hp)
        prep[f"whh_t_l{l}"] = w_hh_p.T.astype(storage_dtype)          # (Hp, 4Hp)
        prep[f"bias_l{l}"] = b_p.reshape(1, 4 * Hp)                   # f32

    fcw = jnp.asarray(params["fc_weight"], jnp.float32)               # (O, H)
    prep["fcw_t"] = jnp.pad(fcw, ((0, 0), (0, Hp - H))).T.astype(storage_dtype)
    prep["fcb"] = jnp.asarray(params["fc_bias"], jnp.float32).reshape(1, -1)
    return prep


# ----------------------------------------------------------------------------
# Model forward (h0 = c0 = zeros, matching the PyTorch module)
# ----------------------------------------------------------------------------
def lstm_model_forward(x_btd, prep, *, time_chunk_target=64, batch_shards=1):
    """x_btd : (B, T, D) batch_first input.  Returns (B, output_dim) f32."""
    x = jnp.asarray(x_btd)
    B, T, _ = x.shape
    Hp = prep["hidden_pad"]
    L = prep["layer_dim"]
    sd = prep["storage_dtype"]

    # Pad batch to the sublane tile (and to the shard count), time-major once.
    B_pad = _round_up(max(B, 8), 8 * batch_shards)
    seq = jnp.transpose(x, (1, 0, 2)).astype(sd)                  # (T, B, D)
    if B_pad != B:
        seq = jnp.pad(seq, ((0, 0), (0, B_pad - B), (0, 0)))

    Tc = _largest_divisor_leq(T, time_chunk_target)               # time-chunk size

    out = None
    for l in range(L):
        wih_t = prep[f"wih_t_l{l}"]
        whh_t = prep[f"whh_t_l{l}"]
        bias = prep[f"bias_l{l}"]
        if l < L - 1:
            seq = _lstm_layer(seq, wih_t, bias, whh_t, Hp, chunk=Tc,
                              batch_shards=batch_shards, out_dtype=sd)
        else:
            out = _lstm_layer(seq, wih_t, bias, whh_t, Hp, chunk=Tc,
                              batch_shards=batch_shards, out_dtype=jnp.float32,
                              fc=(prep["fcw_t"], prep["fcb"]))
    return out[:B]


# ----------------------------------------------------------------------------
# Pure-JAX reference (for verification)
# ----------------------------------------------------------------------------
def _ref_forward(x_btd, params):
    x = jnp.asarray(x_btd, jnp.float32)
    B, T, _ = x.shape
    H = params["hidden_dim"]
    seq = jnp.transpose(x, (1, 0, 2))
    for l in range(params["layer_dim"]):
        w_ih = params[f"weight_ih_l{l}"]
        w_hh = params[f"weight_hh_l{l}"]
        b = params[f"bias_ih_l{l}"] + params[f"bias_hh_l{l}"]

        def step(carry, x_t):
            h, c = carry
            g = x_t @ w_ih.T + h @ w_hh.T + b
            i = jax.nn.sigmoid(g[:, 0 * H:1 * H])
            f = jax.nn.sigmoid(g[:, 1 * H:2 * H])
            gg = jnp.tanh(g[:, 2 * H:3 * H])
            o = jax.nn.sigmoid(g[:, 3 * H:4 * H])
            c = f * c + i * gg
            h = o * jnp.tanh(c)
            return (h, c), h

        init = (jnp.zeros((B, H), jnp.float32), jnp.zeros((B, H), jnp.float32))
        _, seq = jax.lax.scan(step, init, seq)
    return seq[-1] @ params["fc_weight"].T + params["fc_bias"]


# ----------------------------------------------------------------------------
# Deterministic parameter init (shapes match torch.nn.LSTM / nn.Linear)
# ----------------------------------------------------------------------------
def init_params(key, input_dim, hidden_dim, layer_dim, output_dim):
    params = {"hidden_dim": hidden_dim, "layer_dim": layer_dim}
    k = 1.0 / jnp.sqrt(hidden_dim)
    for l in range(layer_dim):
        d_in = input_dim if l == 0 else hidden_dim
        key, k1, k2, k3, k4 = jax.random.split(key, 5)
        params[f"weight_ih_l{l}"] = jax.random.uniform(k1, (4 * hidden_dim, d_in), jnp.float32, -k, k)
        params[f"weight_hh_l{l}"] = jax.random.uniform(k2, (4 * hidden_dim, hidden_dim), jnp.float32, -k, k)
        params[f"bias_ih_l{l}"] = jax.random.uniform(k3, (4 * hidden_dim,), jnp.float32, -k, k)
        params[f"bias_hh_l{l}"] = jax.random.uniform(k4, (4 * hidden_dim,), jnp.float32, -k, k)
    key, k1, k2 = jax.random.split(key, 3)
    params["fc_weight"] = jax.random.uniform(k1, (output_dim, hidden_dim), jnp.float32, -k, k)
    params["fc_bias"] = jax.random.uniform(k2, (output_dim,), jnp.float32, -k, k)
    return params


if __name__ == "__main__":
    # small shapes consistent with the module's forward
    batch, seq_len, input_dim, hidden_dim, layer_dim, output_dim = 2, 8, 16, 32, 2, 4

    key = jax.random.PRNGKey(0)
    key, kx = jax.random.split(key)
    x = jax.random.normal(kx, (batch, seq_len, input_dim), jnp.float32)
    params = init_params(key, input_dim, hidden_dim, layer_dim, output_dim)

    ref = jax.block_until_ready(_ref_forward(x, params))

    # f32 storage: bit-for-bit semantics of the original module.
    prep_f32 = prepare_params(params, jnp.float32)
    out = jax.block_until_ready(lstm_model_forward(x, prep_f32))
    assert out.shape == (batch, output_dim)
    assert jnp.allclose(out, ref, atol=1e-4, rtol=1e-4), "f32 mismatch vs reference"

    # bf16 storage path (halves HBM/VMEM; f32 accumulation + f32 activations).
    prep_bf16 = prepare_params(params, jnp.bfloat16)
    out_bf16 = jax.block_until_ready(lstm_model_forward(x, prep_bf16))
    assert jnp.allclose(out_bf16, ref, atol=5e-2, rtol=5e-2), "bf16 mismatch vs reference"

    # batch-sharded path (the "parallel" grid axis used by v7x's 2 TensorCores).
    key, kx2 = jax.random.split(key)
    x2 = jax.random.normal(kx2, (16, seq_len, input_dim), jnp.float32)
    ref2 = jax.block_until_ready(_ref_forward(x2, params))
    out2 = jax.block_until_ready(lstm_model_forward(x2, prep_f32, batch_shards=2))
    assert jnp.allclose(out2, ref2, atol=1e-4, rtol=1e-4), "sharded mismatch vs reference"

    print("KERNEL_OK")
</pallas_src>

<mosaic_0001>
module attributes {stable_mosaic.version = 11 : i64} {
  func.func @_lstm_layer_kernel(%arg0: i32, %arg1: i32, %arg2: memref<8x8x16xf32, #tpu.memory_space<vmem>>, %arg3: memref<16x512xf32, #tpu.memory_space<vmem>>, %arg4: memref<1x512xf32, #tpu.memory_space<vmem>>, %arg5: memref<128x512xf32, #tpu.memory_space<vmem>>, %arg6: memref<8x8x128xf32, #tpu.memory_space<vmem>>, %arg7: memref<8x128xf32, #tpu.memory_space<vmem>>, %arg8: memref<8x128xf32, #tpu.memory_space<vmem>>, %arg9: memref<8x8x512xf32, #tpu.memory_space<vmem>>) attributes {dimension_semantics = [#tpu.dimension_semantics<parallel>, #tpu.dimension_semantics<arbitrary>], iteration_bounds = array<i64: 1, 1>, scalar_prefetch = 0 : i64, scratch_operands = 3 : i64, tpu.core_type = #tpu.core_type<tc>, window_params = [{transform_indices = @transform_0, window_bounds = array<i64: 8, 8, 16>}, {pipeline_mode = #tpu.pipeline_mode<synchronous>, transform_indices = @transform_1, window_bounds = array<i64: 16, 512>}, {pipeline_mode = #tpu.pipeline_mode<synchronous>, transform_indices = @transform_2, window_bounds = array<i64: 1, 512>}, {pipeline_mode = #tpu.pipeline_mode<synchronous>, transform_indices = @transform_3, window_bounds = array<i64: 128, 512>}, {transform_indices = @transform_4, window_bounds = array<i64: 8, 8, 128>}]} {
    %c0_i32 = arith.constant 0 : i32
    %0 = arith.cmpi eq, %arg1, %c0_i32 : i32
    %1 = arith.extui %0 : i1 to i32
    %c0_i32_0 = arith.constant 0 : i32
    %2 = arith.cmpi ne, %1, %c0_i32_0 : i32
    scf.if %2 {
      %cst_85 = arith.constant 0.000000e+00 : f32
      %289 = vector.broadcast %cst_85 : f32 to vector<8x128xf32>
      %c0_86 = arith.constant 0 : index
      %c0_87 = arith.constant 0 : index
      %290 = vector.load %arg7[%c0_86, %c0_87] : memref<8x128xf32, #tpu.memory_space<vmem>>, vector<8x128xf32>
      tpu.vector_store %arg7[%c0_86, %c0_87], %289 {strides = array<i32>} : memref<8x128xf32, #tpu.memory_space<vmem>>, vector<8x128xf32>,
      %cst_88 = arith.constant 0.000000e+00 : f32
      %291 = vector.broadcast %cst_88 : f32 to vector<8x128xf32>
      %c0_89 = arith.constant 0 : index
      %c0_90 = arith.constant 0 : index
      %292 = vector.load %arg8[%c0_89, %c0_90] : memref<8x128xf32, #tpu.memory_space<vmem>>, vector<8x128xf32>
      tpu.vector_store %arg8[%c0_89, %c0_90], %291 {strides = array<i32>} : memref<8x128xf32, #tpu.memory_space<vmem>>, vector<8x128xf32>,
    } else {
    }
    %c0 = arith.constant 0 : index
    %c0_1 = arith.constant 0 : index
    %c0_2 = arith.constant 0 : index
    %3 = vector.load %arg2[%c0, %c0_1, %c0_2] : memref<8x8x16xf32, #tpu.memory_space<vmem>>, vector<8x8x16xf32>
    %4 = vector.shape_cast %3 : vector<8x8x16xf32> to vector<64x16xf32>
    %c0_3 = arith.constant 0 : index
    %c0_4 = arith.constant 0 : index
    %5 = vector.load %arg3[%c0_3, %c0_4] : memref<16x512xf32, #tpu.memory_space<vmem>>, vector<16x512xf32>
    %cst = arith.constant dense<0.000000e+00> : vector<64x512xf32>
    %6 = tpu.matmul %4, %5, %cst {dimension_numbers = #tpu.dot_dimension_numbers<[1], [0], [0], [1], [0, 0, 1, 1], [], []>} : vector<64x16xf32>, vector<16x512xf32>, vector<64x512xf32> -> vector<64x512xf32>
    %c0_5 = arith.constant 0 : index
    %c0_6 = arith.constant 0 : index
    %7 = vector.load %arg4[%c0_5, %c0_6] : memref<1x512xf32, #tpu.memory_space<vmem>>, vector<1x512xf32>
    %8 = vector.broadcast %7 : vector<1x512xf32> to vector<64x512xf32>
    %9 = arith.addf %6, %8 : vector<64x512xf32>
    %10 = vector.shape_cast %9 : vector<64x512xf32> to vector<8x8x512xf32>
    %c0_7 = arith.constant 0 : index
    %c0_8 = arith.constant 0 : index
    %c0_9 = arith.constant 0 : index
    %11 = vector.load %arg9[%c0_7, %c0_8, %c0_9] : memref<8x8x512xf32, #tpu.memory_space<vmem>>, vector<8x8x512xf32>
    tpu.vector_store %arg9[%c0_7, %c0_8, %c0_9], %10 {strides = array<i32>} : memref<8x8x512xf32, #tpu.memory_space<vmem>>, vector<8x8x512xf32>,
    %c0_10 = arith.constant 0 : index
    %c0_11 = arith.constant 0 : index
    %12 = vector.load %arg5[%c0_10, %c0_11] : memref<128x512xf32, #tpu.memory_space<vmem>>, vector<128x512xf32>
    %c0_12 = arith.constant 0 : index
    %c0_13 = arith.constant 0 : index
    %13 = vector.load %arg7[%c0_12, %c0_13] : memref<8x128xf32, #tpu.memory_space<vmem>>, vector<8x128xf32>
    %c0_14 = arith.constant 0 : index
    %c0_15 = arith.constant 0 : index
    %14 = vector.load %arg8[%c0_14, %c0_15] : memref<8x128xf32, #tpu.memory_space<vmem>>, vector<8x128xf32>
    %c0_i32_16 = arith.constant 0 : i32
    %15 = arith.index_cast %c0_i32_16 : i32 to index
    %c0_17 = arith.constant 0 : index
    %c0_18 = arith.constant 0 : index
    %16 = vector.load %arg9[%15, %c0_17, %c0_18] : memref<8x8x512xf32, #tpu.memory_space<vmem>>, vector<1x8x512xf32>
    %17 = vector.shape_cast %16 : vector<1x8x512xf32> to vector<8x512xf32>
    %cst_19 = arith.constant dense<0.000000e+00> : vector<8x512xf32>
    %18 = tpu.matmul %13, %12, %cst_19 {dimension_numbers = #tpu.dot_dimension_numbers<[1], [0], [0], [1], [0, 0, 1, 1], [], []>} : vector<8x128xf32>, vector<128x512xf32>, vector<8x512xf32> -> vector<8x512xf32>
    %19 = arith.addf %17, %18 : vector<8x512xf32>
    %20 = vector.extract_strided_slice %19 {offsets = [0, 0], sizes = [8, 128], strides = [1, 1]} : vector<8x512xf32> to vector<8x128xf32>
    %21 = arith.negf %20 : vector<8x128xf32>
    %22 = math.exp %21 : vector<8x128xf32>
    %cst_20 = arith.constant 1.000000e+00 : f32
    %23 = vector.broadcast %cst_20 : f32 to vector<8x128xf32>
    %24 = arith.addf %23, %22 : vector<8x128xf32>
    %25 = arith.divf %23, %24 : vector<8x128xf32>
    %26 = vector.extract_strided_slice %19 {offsets = [0, 128], sizes = [8, 128], strides = [1, 1]} : vector<8x512xf32> to vector<8x128xf32>
    %27 = arith.negf %26 : vector<8x128xf32>
    %28 = math.exp %27 : vector<8x128xf32>
    %cst_21 = arith.constant 1.000000e+00 : f32
    %29 = vector.broadcast %cst_21 : f32 to vector<8x128xf32>
    %30 = arith.addf %29, %28 : vector<8x128xf32>
    %31 = arith.divf %29, %30 : vector<8x128xf32>
    %32 = vector.extract_strided_slice %19 {offsets = [0, 256], sizes = [8, 128], strides = [1, 1]} : vector<8x512xf32> to vector<8x128xf32>
    %33 = math.tanh %32 : vector<8x128xf32>
    %34 = vector.extract_strided_slice %19 {offsets = [0, 384], sizes = [8, 128], strides = [1, 1]} : vector<8x512xf32> to vector<8x128xf32>
    %35 = arith.negf %34 : vector<8x128xf32>
    %36 = math.exp %35 : vector<8x128xf32>
    %cst_22 = arith.constant 1.000000e+00 : f32
    %37 = vector.broadcast %cst_22 : f32 to vector<8x128xf32>
    %38 = arith.addf %37, %36 : vector<8x128xf32>
    %39 = arith.divf %37, %38 : vector<8x128xf32>
    %40 = arith.mulf %31, %14 : vector<8x128xf32>
    %41 = arith.mulf %25, %33 : vector<8x128xf32>
    %42 = arith.addf %40, %41 : vector<8x128xf32>
    %43 = math.tanh %42 : vector<8x128xf32>
    %44 = arith.mulf %39, %43 : vector<8x128xf32>
    %45 = arith.index_cast %c0_i32_16 : i32 to index
    %c0_23 = arith.constant 0 : index
    %c0_24 = arith.constant 0 : index
    %46 = vector.load %arg6[%45, %c0_23, %c0_24] : memref<8x8x128xf32, #tpu.memory_space<vmem>>, vector<1x8x128xf32>
    %47 = vector.shape_cast %46 : vector<1x8x128xf32> to vector<8x128xf32>
    %48 = vector.shape_cast %44 : vector<8x128xf32> to vector<1x8x128xf32>
    tpu.vector_store %arg6[%45, %c0_23, %c0_24], %48 {strides = array<i32>} : memref<8x8x128xf32, #tpu.memory_space<vmem>>, vector<1x8x128xf32>,
    %c1_i32 = arith.constant 1 : i32
    %49 = arith.index_cast %c1_i32 : i32 to index
    %c0_25 = arith.constant 0 : index
    %c0_26 = arith.constant 0 : index
    %50 = vector.load %arg9[%49, %c0_25, %c0_26] : memref<8x8x512xf32, #tpu.memory_space<vmem>>, vector<1x8x512xf32>
    %51 = vector.shape_cast %50 : vector<1x8x512xf32> to vector<8x512xf32>
    %cst_27 = arith.constant dense<0.000000e+00> : vector<8x512xf32>
    %52 = tpu.matmul %44, %12, %cst_27 {dimension_numbers = #tpu.dot_dimension_numbers<[1], [0], [0], [1], [0, 0, 1, 1], [], []>} : vector<8x128xf32>, vector<128x512xf32>, vector<8x512xf32> -> vector<8x512xf32>
    %53 = arith.addf %51, %52 : vector<8x512xf32>
    %54 = vector.extract_strided_slice %53 {offsets = [0, 0], sizes = [8, 128], strides = [1, 1]} : vector<8x512xf32> to vector<8x128xf32>
    %55 = arith.negf %54 : vector<8x128xf32>
    %56 = math.exp %55 : vector<8x128xf32>
    %cst_28 = arith.constant 1.000000e+00 : f32
    %57 = vector.broadcast %cst_28 : f32 to vector<8x128xf32>
    %58 = arith.addf %57, %56 : vector<8x128xf32>
    %59 = arith.divf %57, %58 : vector<8x128xf32>
    %60 = vector.extract_strided_slice %53 {offsets = [0, 128], sizes = [8, 128], strides = [1, 1]} : vector<8x512xf32> to vector<8x128xf32>
    %61 = arith.negf %60 : vector<8x128xf32>
    %62 = math.exp %61 : vector<8x128xf32>
    %cst_29 = arith.constant 1.000000e+00 : f32
    %63 = vector.broadcast %cst_29 : f32 to vector<8x128xf32>
    %64 = arith.addf %63, %62 : vector<8x128xf32>
    %65 = arith.divf %63, %64 : vector<8x128xf32>
    %66 = vector.extract_strided_slice %53 {offsets = [0, 256], sizes = [8, 128], strides = [1, 1]} : vector<8x512xf32> to vector<8x128xf32>
    %67 = math.tanh %66 : vector<8x128xf32>
    %68 = vector.extract_strided_slice %53 {offsets = [0, 384], sizes = [8, 128], strides = [1, 1]} : vector<8x512xf32> to vector<8x128xf32>
    %69 = arith.negf %68 : vector<8x128xf32>
    %70 = math.exp %69 : vector<8x128xf32>
    %cst_30 = arith.constant 1.000000e+00 : f32
    %71 = vector.broadcast %cst_30 : f32 to vector<8x128xf32>
    %72 = arith.addf %71, %70 : vector<8x128xf32>
    %73 = arith.divf %71, %72 : vector<8x128xf32>
    %74 = arith.mulf %65, %42 : vector<8x128xf32>
    %75 = arith.mulf %59, %67 : vector<8x128xf32>
    %76 = arith.addf %74, %75 : vector<8x128xf32>
    %77 = math.tanh %76 : vector<8x128xf32>
    %78 = arith.mulf %73, %77 : vector<8x128xf32>
    %79 = arith.index_cast %c1_i32 : i32 to index
    %c0_31 = arith.constant 0 : index
    %c0_32 = arith.constant 0 : index
    %80 = vector.load %arg6[%79, %c0_31, %c0_32] : memref<8x8x128xf32, #tpu.memory_space<vmem>>, vector<1x8x128xf32>
    %81 = vector.shape_cast %80 : vector<1x8x128xf32> to vector<8x128xf32>
    %82 = vector.shape_cast %78 : vector<8x128xf32> to vector<1x8x128xf32>
    tpu.vector_store %arg6[%79, %c0_31, %c0_32], %82 {strides = array<i32>} : memref<8x8x128xf32, #tpu.memory_space<vmem>>, vector<1x8x128xf32>,
    %c2_i32 = arith.constant 2 : i32
    %83 = arith.index_cast %c2_i32 : i32 to index
    %c0_33 = arith.constant 0 : index
    %c0_34 = arith.constant 0 : index
    %84 = vector.load %arg9[%83, %c0_33, %c0_34] : memref<8x8x512xf32, #tpu.memory_space<vmem>>, vector<1x8x512xf32>
    %85 = vector.shape_cast %84 : vector<1x8x512xf32> to vector<8x512xf32>
    %cst_35 = arith.constant dense<0.000000e+00> : vector<8x512xf32>
    %86 = tpu.matmul %78, %12, %cst_35 {dimension_numbers = #tpu.dot_dimension_numbers<[1], [0], [0], [1], [0, 0, 1, 1], [], []>} : vector<8x128xf32>, vector<128x512xf32>, vector<8x512xf32> -> vector<8x512xf32>
    %87 = arith.addf %85, %86 : vector<8x512xf32>
    %88 = vector.extract_strided_slice %87 {offsets = [0, 0], sizes = [8, 128], strides = [1, 1]} : vector<8x512xf32> to vector<8x128xf32>
    %89 = arith.negf %88 : vector<8x128xf32>
    %90 = math.exp %89 : vector<8x128xf32>
    %cst_36 = arith.constant 1.000000e+00 : f32
    %91 = vector.broadcast %cst_36 : f32 to vector<8x128xf32>
    %92 = arith.addf %91, %90 : vector<8x128xf32>
    %93 = arith.divf %91, %92 : vector<8x128xf32>
    %94 = vector.extract_strided_slice %87 {offsets = [0, 128], sizes = [8, 128], strides = [1, 1]} : vector<8x512xf32> to vector<8x128xf32>
    %95 = arith.negf %94 : vector<8x128xf32>
    %96 = math.exp %95 : vector<8x128xf32>
    %cst_37 = arith.constant 1.000000e+00 : f32
    %97 = vector.broadcast %cst_37 : f32 to vector<8x128xf32>
    %98 = arith.addf %97, %96 : vector<8x128xf32>
    %99 = arith.divf %97, %98 : vector<8x128xf32>
    %100 = vector.extract_strided_slice %87 {offsets = [0, 256], sizes = [8, 128], strides = [1, 1]} : vector<8x512xf32> to vector<8x128xf32>
    %101 = math.tanh %100 : vector<8x128xf32>
    %102 = vector.extract_strided_slice %87 {offsets = [0, 384], sizes = [8, 128], strides = [1, 1]} : vector<8x512xf32> to vector<8x128xf32>
    %103 = arith.negf %102 : vector<8x128xf32>
    %104 = math.exp %103 : vector<8x128xf32>
    %cst_38 = arith.constant 1.000000e+00 : f32
    %105 = vector.broadcast %cst_38 : f32 to vector<8x128xf32>
    %106 = arith.addf %105, %104 : vector<8x128xf32>
    %107 = arith.divf %105, %106 : vector<8x128xf32>
    %108 = arith.mulf %99, %76 : vector<8x128xf32>
    %109 = arith.mulf %93, %101 : vector<8x128xf32>
    %110 = arith.addf %108, %109 : vector<8x128xf32>
    %111 = math.tanh %110 : vector<8x128xf32>
    %112 = arith.mulf %107, %111 : vector<8x128xf32>
    %113 = arith.index_cast %c2_i32 : i32 to index
    %c0_39 = arith.constant 0 : index
    %c0_40 = arith.constant 0 : index
    %114 = vector.load %arg6[%113, %c0_39, %c0_40] : memref<8x8x128xf32, #tpu.memory_space<vmem>>, vector<1x8x128xf32>
    %115 = vector.shape_cast %114 : vector<1x8x128xf32> to vector<8x128xf32>
    %116 = vector.shape_cast %112 : vector<8x128xf32> to vector<1x8x128xf32>
    tpu.vector_store %arg6[%113, %c0_39, %c0_40], %116 {strides = array<i32>} : memref<8x8x128xf32, #tpu.memory_space<vmem>>, vector<1x8x128xf32>,
    %c3_i32 = arith.constant 3 : i32
    %117 = arith.index_cast %c3_i32 : i32 to index
    %c0_41 = arith.constant 0 : index
    %c0_42 = arith.constant 0 : index
    %118 = vector.load %arg9[%117, %c0_41, %c0_42] : memref<8x8x512xf32, #tpu.memory_space<vmem>>, vector<1x8x512xf32>
    %119 = vector.shape_cast %118 : vector<1x8x512xf32> to vector<8x512xf32>
    %cst_43 = arith.constant dense<0.000000e+00> : vector<8x512xf32>
    %120 = tpu.matmul %112, %12, %cst_43 {dimension_numbers = #tpu.dot_dimension_numbers<[1], [0], [0], [1], [0, 0, 1, 1], [], []>} : vector<8x128xf32>, vector<128x512xf32>, vector<8x512xf32> -> vector<8x512xf32>
    %121 = arith.addf %119, %120 : vector<8x512xf32>
    %122 = vector.extract_strided_slice %121 {offsets = [0, 0], sizes = [8, 128], strides = [1, 1]} : vector<8x512xf32> to vector<8x128xf32>
    %123 = arith.negf %122 : vector<8x128xf32>
    %124 = math.exp %123 : vector<8x128xf32>
    %cst_44 = arith.constant 1.000000e+00 : f32
    %125 = vector.broadcast %cst_44 : f32 to vector<8x128xf32>
    %126 = arith.addf %125, %124 : vector<8x128xf32>
    %127 = arith.divf %125, %126 : vector<8x128xf32>
    %128 = vector.extract_strided_slice %121 {offsets = [0, 128], sizes = [8, 128], strides = [1, 1]} : vector<8x512xf32> to vector<8x128xf32>
    %129 = arith.negf %128 : vector<8x128xf32>
    %130 = math.exp %129 : vector<8x128xf32>
    %cst_45 = arith.constant 1.000000e+00 : f32
    %131 = vector.broadcast %cst_45 : f32 to vector<8x128xf32>
    %132 = arith.addf %131, %130 : vector<8x128xf32>
    %133 = arith.divf %131, %132 : vector<8x128xf32>
    %134 = vector.extract_strided_slice %121 {offsets = [0, 256], sizes = [8, 128], strides = [1, 1]} : vector<8x512xf32> to vector<8x128xf32>
    %135 = math.tanh %134 : vector<8x128xf32>
    %136 = vector.extract_strided_slice %121 {offsets = [0, 384], sizes = [8, 128], strides = [1, 1]} : vector<8x512xf32> to vector<8x128xf32>
    %137 = arith.negf %136 : vector<8x128xf32>
    %138 = math.exp %137 : vector<8x128xf32>
    %cst_46 = arith.constant 1.000000e+00 : f32
    %139 = vector.broadcast %cst_46 : f32 to vector<8x128xf32>
    %140 = arith.addf %139, %138 : vector<8x128xf32>
    %141 = arith.divf %139, %140 : vector<8x128xf32>
    %142 = arith.mulf %133, %110 : vector<8x128xf32>
    %143 = arith.mulf %127, %135 : vector<8x128xf32>
    %144 = arith.addf %142, %143 : vector<8x128xf32>
    %145 = math.tanh %144 : vector<8x128xf32>
    %146 = arith.mulf %141, %145 : vector<8x128xf32>
    %147 = arith.index_cast %c3_i32 : i32 to index
    %c0_47 = arith.constant 0 : index
    %c0_48 = arith.constant 0 : index
    %148 = vector.load %arg6[%147, %c0_47, %c0_48] : memref<8x8x128xf32, #tpu.memory_space<vmem>>, vector<1x8x128xf32>
    %149 = vector.shape_cast %148 : vector<1x8x128xf32> to vector<8x128xf32>
    %150 = vector.shape_cast %146 : vector<8x128xf32> to vector<1x8x128xf32>
    tpu.vector_store %arg6[%147, %c0_47, %c0_48], %150 {strides = array<i32>} : memref<8x8x128xf32, #tpu.memory_space<vmem>>, vector<1x8x128xf32>,
    %c4_i32 = arith.constant 4 : i32
    %151 = arith.index_cast %c4_i32 : i32 to index
    %c0_49 = arith.constant 0 : index
    %c0_50 = arith.constant 0 : index
    %152 = vector.load %arg9[%151, %c0_49, %c0_50] : memref<8x8x512xf32, #tpu.memory_space<vmem>>, vector<1x8x512xf32>
    %153 = vector.shape_cast %152 : vector<1x8x512xf32> to vector<8x512xf32>
    %cst_51 = arith.constant dense<0.000000e+00> : vector<8x512xf32>
    %154 = tpu.matmul %146, %12, %cst_51 {dimension_numbers = #tpu.dot_dimension_numbers<[1], [0], [0], [1], [0, 0, 1, 1], [], []>} : vector<8x128xf32>, vector<128x512xf32>, vector<8x512xf32> -> vector<8x512xf32>
    %155 = arith.addf %153, %154 : vector<8x512xf32>
    %156 = vector.extract_strided_slice %155 {offsets = [0, 0], sizes = [8, 128], strides = [1, 1]} : vector<8x512xf32> to vector<8x128xf32>
    %157 = arith.negf %156 : vector<8x128xf32>
    %158 = math.exp %157 : vector<8x128xf32>
    %cst_52 = arith.constant 1.000000e+00 : f32
    %159 = vector.broadcast %cst_52 : f32 to vector<8x128xf32>
    %160 = arith.addf %159, %158 : vector<8x128xf32>
    %161 = arith.divf %159, %160 : vector<8x128xf32>
    %162 = vector.extract_strided_slice %155 {offsets = [0, 128], sizes = [8, 128], strides = [1, 1]} : vector<8x512xf32> to vector<8x128xf32>
    %163 = arith.negf %162 : vector<8x128xf32>
    %164 = math.exp %163 : vector<8x128xf32>
    %cst_53 = arith.constant 1.000000e+00 : f32
    %165 = vector.broadcast %cst_53 : f32 to vector<8x128xf32>
    %166 = arith.addf %165, %164 : vector<8x128xf32>
    %167 = arith.divf %165, %166 : vector<8x128xf32>
    %168 = vector.extract_strided_slice %155 {offsets = [0, 256], sizes = [8, 128], strides = [1, 1]} : vector<8x512xf32> to vector<8x128xf32>
    %169 = math.tanh %168 : vector<8x128xf32>
    %170 = vector.extract_strided_slice %155 {offsets = [0, 384], sizes = [8, 128], strides = [1, 1]} : vector<8x512xf32> to vector<8x128xf32>
    %171 = arith.negf %170 : vector<8x128xf32>
    %172 = math.exp %171 : vector<8x128xf32>
    %cst_54 = arith.constant 1.000000e+00 : f32
    %173 = vector.broadcast %cst_54 : f32 to vector<8x128xf32>
    %174 = arith.addf %173, %172 : vector<8x128xf32>
    %175 = arith.divf %173, %174 : vector<8x128xf32>
    %176 = arith.mulf %167, %144 : vector<8x128xf32>
    %177 = arith.mulf %161, %169 : vector<8x128xf32>
    %178 = arith.addf %176, %177 : vector<8x128xf32>
    %179 = math.tanh %178 : vector<8x128xf32>
    %180 = arith.mulf %175, %179 : vector<8x128xf32>
    %181 = arith.index_cast %c4_i32 : i32 to index
    %c0_55 = arith.constant 0 : index
    %c0_56 = arith.constant 0 : index
    %182 = vector.load %arg6[%181, %c0_55, %c0_56] : memref<8x8x128xf32, #tpu.memory_space<vmem>>, vector<1x8x128xf32>
    %183 = vector.shape_cast %182 : vector<1x8x128xf32> to vector<8x128xf32>
    %184 = vector.shape_cast %180 : vector<8x128xf32> to vector<1x8x128xf32>
    tpu.vector_store %arg6[%181, %c0_55, %c0_56], %184 {strides = array<i32>} : memref<8x8x128xf32, #tpu.memory_space<vmem>>, vector<1x8x128xf32>,
    %c5_i32 = arith.constant 5 : i32
    %185 = arith.index_cast %c5_i32 : i32 to index
    %c0_57 = arith.constant 0 : index
    %c0_58 = arith.constant 0 : index
    %186 = vector.load %arg9[%185, %c0_57, %c0_58] : memref<8x8x512xf32, #tpu.memory_space<vmem>>, vector<1x8x512xf32>
    %187 = vector.shape_cast %186 : vector<1x8x512xf32> to vector<8x512xf32>
    %cst_59 = arith.constant dense<0.000000e+00> : vector<8x512xf32>
    %188 = tpu.matmul %180, %12, %cst_59 {dimension_numbers = #tpu.dot_dimension_numbers<[1], [0], [0], [1], [0, 0, 1, 1], [], []>} : vector<8x128xf32>, vector<128x512xf32>, vector<8x512xf32> -> vector<8x512xf32>
    %189 = arith.addf %187, %188 : vector<8x512xf32>
    %190 = vector.extract_strided_slice %189 {offsets = [0, 0], sizes = [8, 128], strides = [1, 1]} : vector<8x512xf32> to vector<8x128xf32>
    %191 = arith.negf %190 : vector<8x128xf32>
    %192 = math.exp %191 : vector<8x128xf32>
    %cst_60 = arith.constant 1.000000e+00 : f32
    %193 = vector.broadcast %cst_60 : f32 to vector<8x128xf32>
    %194 = arith.addf %193, %192 : vector<8x128xf32>
    %195 = arith.divf %193, %194 : vector<8x128xf32>
    %196 = vector.extract_strided_slice %189 {offsets = [0, 128], sizes = [8, 128], strides = [1, 1]} : vector<8x512xf32> to vector<8x128xf32>
    %197 = arith.negf %196 : vector<8x128xf32>
    %198 = math.exp %197 : vector<8x128xf32>
    %cst_61 = arith.constant 1.000000e+00 : f32
    %199 = vector.broadcast %cst_61 : f32 to vector<8x128xf32>
    %200 = arith.addf %199, %198 : vector<8x128xf32>
    %201 = arith.divf %199, %200 : vector<8x128xf32>
    %202 = vector.extract_strided_slice %189 {offsets = [0, 256], sizes = [8, 128], strides = [1, 1]} : vector<8x512xf32> to vector<8x128xf32>
    %203 = math.tanh %202 : vector<8x128xf32>
    %204 = vector.extract_strided_slice %189 {offsets = [0, 384], sizes = [8, 128], strides = [1, 1]} : vector<8x512xf32> to vector<8x128xf32>
    %205 = arith.negf %204 : vector<8x128xf32>
    %206 = math.exp %205 : vector<8x128xf32>
    %cst_62 = arith.constant 1.000000e+00 : f32
    %207 = vector.broadcast %cst_62 : f32 to vector<8x128xf32>
    %208 = arith.addf %207, %206 : vector<8x128xf32>
    %209 = arith.divf %207, %208 : vector<8x128xf32>
    %210 = arith.mulf %201, %178 : vector<8x128xf32>
    %211 = arith.mulf %195, %203 : vector<8x128xf32>
    %212 = arith.addf %210, %211 : vector<8x128xf32>
    %213 = math.tanh %212 : vector<8x128xf32>
    %214 = arith.mulf %209, %213 : vector<8x128xf32>
    %215 = arith.index_cast %c5_i32 : i32 to index
    %c0_63 = arith.constant 0 : index
    %c0_64 = arith.constant 0 : index
    %216 = vector.load %arg6[%215, %c0_63, %c0_64] : memref<8x8x128xf32, #tpu.memory_space<vmem>>, vector<1x8x128xf32>
    %217 = vector.shape_cast %216 : vector<1x8x128xf32> to vector<8x128xf32>
    %218 = vector.shape_cast %214 : vector<8x128xf32> to vector<1x8x128xf32>
    tpu.vector_store %arg6[%215, %c0_63, %c0_64], %218 {strides = array<i32>} : memref<8x8x128xf32, #tpu.memory_space<vmem>>, vector<1x8x128xf32>,
    %c6_i32 = arith.constant 6 : i32
    %219 = arith.index_cast %c6_i32 : i32 to index
    %c0_65 = arith.constant 0 : index
    %c0_66 = arith.constant 0 : index
    %220 = vector.load %arg9[%219, %c0_65, %c0_66] : memref<8x8x512xf32, #tpu.memory_space<vmem>>, vector<1x8x512xf32>
    %221 = vector.shape_cast %220 : vector<1x8x512xf32> to vector<8x512xf32>
    %cst_67 = arith.constant dense<0.000000e+00> : vector<8x512xf32>
    %222 = tpu.matmul %214, %12, %cst_67 {dimension_numbers = #tpu.dot_dimension_numbers<[1], [0], [0], [1], [0, 0, 1, 1], [], []>} : vector<8x128xf32>, vector<128x512xf32>, vector<8x512xf32> -> vector<8x512xf32>
    %223 = arith.addf %221, %222 : vector<8x512xf32>
    %224 = vector.extract_strided_slice %223 {offsets = [0, 0], sizes = [8, 128], strides = [1, 1]} : vector<8x512xf32> to vector<8x128xf32>
    %225 = arith.negf %224 : vector<8x128xf32>
    %226 = math.exp %225 : vector<8x128xf32>
    %cst_68 = arith.constant 1.000000e+00 : f32
    %227 = vector.broadcast %cst_68 : f32 to vector<8x128xf32>
    %228 = arith.addf %227, %226 : vector<8x128xf32>
    %229 = arith.divf %227, %228 : vector<8x128xf32>
    %230 = vector.extract_strided_slice %223 {offsets = [0, 128], sizes = [8, 128], strides = [1, 1]} : vector<8x512xf32> to vector<8x128xf32>
    %231 = arith.negf %230 : vector<8x128xf32>
    %232 = math.exp %231 : vector<8x128xf32>
    %cst_69 = arith.constant 1.000000e+00 : f32
    %233 = vector.broadcast %cst_69 : f32 to vector<8x128xf32>
    %234 = arith.addf %233, %232 : vector<8x128xf32>
    %235 = arith.divf %233, %234 : vector<8x128xf32>
    %236 = vector.extract_strided_slice %223 {offsets = [0, 256], sizes = [8, 128], strides = [1, 1]} : vector<8x512xf32> to vector<8x128xf32>
    %237 = math.tanh %236 : vector<8x128xf32>
    %238 = vector.extract_strided_slice %223 {offsets = [0, 384], sizes = [8, 128], strides = [1, 1]} : vector<8x512xf32> to vector<8x128xf32>
    %239 = arith.negf %238 : vector<8x128xf32>
    %240 = math.exp %239 : vector<8x128xf32>
    %cst_70 = arith.constant 1.000000e+00 : f32
    %241 = vector.broadcast %cst_70 : f32 to vector<8x128xf32>
    %242 = arith.addf %241, %240 : vector<8x128xf32>
    %243 = arith.divf %241, %242 : vector<8x128xf32>
    %244 = arith.mulf %235, %212 : vector<8x128xf32>
    %245 = arith.mulf %229, %237 : vector<8x128xf32>
    %246 = arith.addf %244, %245 : vector<8x128xf32>
    %247 = math.tanh %246 : vector<8x128xf32>
    %248 = arith.mulf %243, %247 : vector<8x128xf32>
    %249 = arith.index_cast %c6_i32 : i32 to index
    %c0_71 = arith.constant 0 : index
    %c0_72 = arith.constant 0 : index
    %250 = vector.load %arg6[%249, %c0_71, %c0_72] : memref<8x8x128xf32, #tpu.memory_space<vmem>>, vector<1x8x128xf32>
    %251 = vector.shape_cast %250 : vector<1x8x128xf32> to vector<8x128xf32>
    %252 = vector.shape_cast %248 : vector<8x128xf32> to vector<1x8x128xf32>
    tpu.vector_store %arg6[%249, %c0_71, %c0_72], %252 {strides = array<i32>} : memref<8x8x128xf32, #tpu.memory_space<vmem>>, vector<1x8x128xf32>,
    %c7_i32 = arith.constant 7 : i32
    %253 = arith.index_cast %c7_i32 : i32 to index
    %c0_73 = arith.constant 0 : index
    %c0_74 = arith.constant 0 : index
    %254 = vector.load %arg9[%253, %c0_73, %c0_74] : memref<8x8x512xf32, #tpu.memory_space<vmem>>, vector<1x8x512xf32>
    %255 = vector.shape_cast %254 : vector<1x8x512xf32> to vector<8x512xf32>
    %cst_75 = arith.constant dense<0.000000e+00> : vector<8x512xf32>
    %256 = tpu.matmul %248, %12, %cst_75 {dimension_numbers = #tpu.dot_dimension_numbers<[1], [0], [0], [1], [0, 0, 1, 1], [], []>} : vector<8x128xf32>, vector<128x512xf32>, vector<8x512xf32> -> vector<8x512xf32>
    %257 = arith.addf %255, %256 : vector<8x512xf32>
    %258 = vector.extract_strided_slice %257 {offsets = [0, 0], sizes = [8, 128], strides = [1, 1]} : vector<8x512xf32> to vector<8x128xf32>
    %259 = arith.negf %258 : vector<8x128xf32>
    %260 = math.exp %259 : vector<8x128xf32>
    %cst_76 = arith.constant 1.000000e+00 : f32
    %261 = vector.broadcast %cst_76 : f32 to vector<8x128xf32>
    %262 = arith.addf %261, %260 : vector<8x128xf32>
    %263 = arith.divf %261, %262 : vector<8x128xf32>
    %264 = vector.extract_strided_slice %257 {offsets = [0, 128], sizes = [8, 128], strides = [1, 1]} : vector<8x512xf32> to vector<8x128xf32>
    %265 = arith.negf %264 : vector<8x128xf32>
    %266 = math.exp %265 : vector<8x128xf32>
    %cst_77 = arith.constant 1.000000e+00 : f32
    %267 = vector.broadcast %cst_77 : f32 to vector<8x128xf32>
    %268 = arith.addf %267, %266 : vector<8x128xf32>
    %269 = arith.divf %267, %268 : vector<8x128xf32>
    %270 = vector.extract_strided_slice %257 {offsets = [0, 256], sizes = [8, 128], strides = [1, 1]} : vector<8x512xf32> to vector<8x128xf32>
    %271 = math.tanh %270 : vector<8x128xf32>
    %272 = vector.extract_strided_slice %257 {offsets = [0, 384], sizes = [8, 128], strides = [1, 1]} : vector<8x512xf32> to vector<8x128xf32>
    %273 = arith.negf %272 : vector<8x128xf32>
    %274 = math.exp %273 : vector<8x128xf32>
    %cst_78 = arith.constant 1.000000e+00 : f32
    %275 = vector.broadcast %cst_78 : f32 to vector<8x128xf32>
    %276 = arith.addf %275, %274 : vector<8x128xf32>
    %277 = arith.divf %275, %276 : vector<8x128xf32>
    %278 = arith.mulf %269, %246 : vector<8x128xf32>
    %279 = arith.mulf %263, %271 : vector<8x128xf32>
    %280 = arith.addf %278, %279 : vector<8x128xf32>
    %281 = math.tanh %280 : vector<8x128xf32>
    %282 = arith.mulf %277, %281 : vector<8x128xf32>
    %283 = arith.index_cast %c7_i32 : i32 to index
    %c0_79 = arith.constant 0 : index
    %c0_80 = arith.constant 0 : index
    %284 = vector.load %arg6[%283, %c0_79, %c0_80] : memref<8x8x128xf32, #tpu.memory_space<vmem>>, vector<1x8x128xf32>
    %285 = vector.shape_cast %284 : vector<1x8x128xf32> to vector<8x128xf32>
    %286 = vector.shape_cast %282 : vector<8x128xf32> to vector<1x8x128xf32>
    tpu.vector_store %arg6[%283, %c0_79, %c0_80], %286 {strides = array<i32>} : memref<8x8x128xf32, #tpu.memory_space<vmem>>, vector<1x8x128xf32>,
    %c8_i32 = arith.constant 8 : i32
    %c0_81 = arith.constant 0 : index
    %c0_82 = arith.constant 0 : index
    %287 = vector.load %arg7[%c0_81, %c0_82] : memref<8x128xf32, #tpu.memory_space<vmem>>, vector<8x128xf32>
    tpu.vector_store %arg7[%c0_81, %c0_82], %282 {strides = array<i32>} : memref<8x128xf32, #tpu.memory_space<vmem>>, vector<8x128xf32>,
    %c0_83 = arith.constant 0 : index
    %c0_84 = arith.constant 0 : index
    %288 = vector.load %arg8[%c0_83, %c0_84] : memref<8x128xf32, #tpu.memory_space<vmem>>, vector<8x128xf32>
    tpu.vector_store %arg8[%c0_83, %c0_84], %280 {strides = array<i32>} : memref<8x128xf32, #tpu.memory_space<vmem>>, vector<8x128xf32>,
    return
  }
  func.func @transform_0(%arg0: i32, %arg1: i32) -> (i32, i32, i32) {
    %c0_i32 = arith.constant 0 : i32
    %c0_i32_0 = arith.constant 0 : i32
    return %arg1, %arg0, %c0_i32 : i32, i32, i32
  }
  func.func @transform_1(%arg0: i32, %arg1: i32) -> (i32, i32) {
    %c0_i32 = arith.constant 0 : i32
    %c0_i32_0 = arith.constant 0 : i32
    %c0_i32_1 = arith.constant 0 : i32
    return %c0_i32, %c0_i32_0 : i32, i32
  }
  func.func @transform_2(%arg0: i32, %arg1: i32) -> (i32, i32) {
    %c0_i32 = arith.constant 0 : i32
    %c0_i32_0 = arith.constant 0 : i32
    %c0_i32_1 = arith.constant 0 : i32
    return %c0_i32, %c0_i32_0 : i32, i32
  }
  func.func @transform_3(%arg0: i32, %arg1: i32) -> (i32, i32) {
    %c0_i32 = arith.constant 0 : i32
    %c0_i32_0 = arith.constant 0 : i32
    %c0_i32_1 = arith.constant 0 : i32
    return %c0_i32, %c0_i32_0 : i32, i32
  }
  func.func @transform_4(%arg0: i32, %arg1: i32) -> (i32, i32, i32) {
    %c0_i32 = arith.constant 0 : i32
    %c0_i32_0 = arith.constant 0 : i32
    return %arg1, %arg0, %c0_i32 : i32, i32, i32
  }
}

</mosaic_0001>

<bundles_post_ra>
// kernel: tpu_custom_call.1
= control target key start
LH: loop header
LB: loop body
LE: loop exit
PB: predicated region body
PF: predicated region fallthrough
CT: control target
= control target key end

     0   :  { %9 = vsyncpa [#allocation6], 0  ;;  %s3269_s0 = inlined_call_operand.hbm [shape: f32[8,8,16], index: 0, kind: input, shape index: {}]   ;;  %s3270_s1 = inlined_call_operand.hbm [shape: f32[16,512], index: 1, kind: input, shape index: {}]   ;;  %s3271_s2 = inlined_call_operand.hbm [shape: f32[1,512], index: 2, kind: input, shape index: {}]   ;;  %s3272_s3 = inlined_call_operand.hbm [shape: f32[128,512], index: 3, kind: input, shape index: {}]   ;;  %s3273_s4 = inlined_call_operand.hbm [shape: f32[8,8,128], index: 4, kind: output, shape index: {}]  }
   0x1   :  { %10 = vsyncpa [#allocation9], 0 }
   0x2   :  { %11 = vsyncpa [#allocation12], 0 }
   0x3   :  { %12 = vsyncpa [#allocation7], 0  ;;  %s2249_s15 = smov [#allocation8]  }
   0x4   :  { %s30_s16 = sshll.u32 %s2249_s15, 4  ;;  %s31_s16 = int_to_ptr.vmem [resolvable:$true] %s30_s16 }
   0x5   :  { %s2149_s17 = scalar_lea.vmem %s31_s16, 1024  ;;  %p2154_p1 = scmp.lt.s32.totalorder %s31_s16, %s31_s16 }
   0x6   :  { %p2150_p0 = scmp.ne.s32.totalorder %s31_s16, %s2149_s17  ;;  %p2155_p2 = scmp.lt.s32.totalorder %s2149_s17, %s2149_s17 }
   0x8   :  { %p2156_p3 = por %p2155_p2, %p2154_p1 }
   0xa   :  { %p2157_p4 = pnand %p2156_p3, %p2150_p0 }
   0xc   :  { %2160 = shalt.err (!%p2157_p4)
}
   0xd   :  { %s2250_s18 = smov 512   ;;  %s2251_s19 = smov 32  }
   0xe   :  { %36 = dma.hbm_to_vmem [thread:$0]  %s3270_s1, 1024, %s31_s16, [#allocation9], %s2250_s18, %s2250_s18, %s2251_s19  }
   0xf   :  { %s2252_s22 = smov [#allocation5]  }
  0x10   :  { %s18_s23 = sshll.u32 %s2252_s22, 4  ;;  %s19_s23 = int_to_ptr.vmem [resolvable:$true] %s18_s23 }
  0x11   :  { %s2169_s24 = scalar_lea.vmem %s19_s23, 1024  ;;  %p2174_p6 = scmp.lt.s32.totalorder %s19_s23, %s19_s23 }
  0x12   :  { %p2170_p5 = scmp.ne.s32.totalorder %s19_s23, %s2169_s24  ;;  %p2175_p7 = scmp.lt.s32.totalorder %s2169_s24, %s2169_s24 }
  0x14   :  { %p2176_p8 = por %p2175_p7, %p2174_p6 }
  0x16   :  { %p2177_p9 = pnand %p2176_p8, %p2170_p5 }
  0x18   :  { %2180 = shalt.err (!%p2177_p9)
}
  0x19   :  { %s2253_s25 = smov 128   ;;  %s2254_s26 = smov 8  }
  0x1a   :  { %24 = dma.hbm_to_vmem [thread:$0]  %s3269_s0, 1024, %s19_s23, [#allocation6], %s2253_s25, %s2253_s25, %s2254_s26  }
  0x1b   :  { %s2255_s1 = smov [#allocation10]   ;;  %s2256_s30 = smov [#allocation11]  }
  0x1c   :  { %s43_s29 = sshll.u32 %s2255_s1, 4  ;;  %s52_s5 = sshll.u32 %s2256_s30, 4  ;;  %s44_s29 = int_to_ptr.vmem [resolvable:$true] %s43_s29  ;;  %s53_s5 = int_to_ptr.vmem [resolvable:$true] %s52_s5 }
  0x1d   :  { %s2189_s6 = scalar_lea.vmem %s44_s29, 64  ;;  %p2194_p11 = scmp.lt.s32.totalorder %s44_s29, %s44_s29 }
  0x1e   :  { %p2190_p10 = scmp.ne.s32.totalorder %s44_s29, %s2189_s6  ;;  %p2195_p12 = scmp.lt.s32.totalorder %s2189_s6, %s2189_s6 }
  0x20   :  { %p2196_p13 = por %p2195_p12, %p2194_p11 }
  0x22   :  { %p2197_p0 = pnand %p2196_p13, %p2190_p10 }
  0x24   :  { %2200 = shalt.err (!%p2197_p0)
}
  0x25   :  { %46 = dma.hbm_to_vmem [thread:$0]  %s3271_s2, 64, %s44_s29, [#allocation9]  }
  0x26   :  { %s2209_s9 = scalar_lea.vmem %s53_s5, 8192  ;;  %p2214_p2 = scmp.lt.s32.totalorder %s53_s5, %s53_s5 }
  0x27   :  { %p2210_p1 = scmp.ne.s32.totalorder %s53_s5, %s2209_s9  ;;  %p2215_p3 = scmp.lt.s32.totalorder %s2209_s9, %s2209_s9 }
  0x29   :  { %p2216_p4 = por %p2215_p3, %p2214_p2 }
  0x2b   :  { %p2217_p5 = pnand %p2216_p4, %p2210_p1 }
  0x2d   :  { %2220 = shalt.err (!%p2217_p5)
}
  0x2e   :  { %58 = dma.hbm_to_vmem [thread:$0]  %s3272_s3, 8192, %s53_s5, [#allocation12], %s2250_s18, %s2250_s18, %s2251_s19  }
  0x2f   :  { %2241 = dma.done.wait [#allocation6], 1024  }
  0x30   :  { %2242 = vsyncadd [#allocation6], 4294966272 }
  0x31   :  { %2243 = dma.done.wait [#allocation9], 1088  }
  0x32   :  { %2244 = vsyncadd [#allocation9], 4294966208 }
  0x33   :  { %2245 = dma.done.wait [#allocation12], 8192  }
  0x34   :  { %2246 = vsyncadd [#allocation12], 4294959104  ;;  %v3274_v0 = vmov 0.0   ;;  %v90_v1 = vld [vmem:[#allocation8 + $0x28] sm:$0xff]  ;;  %v92_v2 = vld [vmem:[#allocation8 + $0x38] sm:$0xff]  ;;  %vm115_vm0 = vcmask 130048  }
  0x35   :  { %204 = vmatprep.mubr.f32.mxu0 %v3274_v0  ;;  %317 = vmatprep.mubr.f32.mxu1 %v3274_v0  ;;  %v89_v3 = vld [vmem:[#allocation8 + $0x20] sm:$0xff]  ;;  %v91_v4 = vld [vmem:[#allocation8 + $0x30] sm:$0xff]  ;;  %v86_v5 = vld [vmem:[#allocation8 + $0x8] sm:$0xff]  ;;  %s2258_s2 = smov [#allocation13]  }
  0x36   :  { %168 = vmatprep.subr.mxu0 %v90_v1  ;;  %281 = vmatprep.subr.mxu1 %v92_v2  ;;  %v88_v6 = vld [vmem:[#allocation8 + $0x18] sm:$0xff]  ;;  %v85_v7 = vld [vmem:[#allocation8] sm:$0xff]  ;;  %v87_v8 = vld [vmem:[#allocation8 + $0x10] sm:$0xff]  ;;  %s1885_s3 = sshll.u32 %s2258_s2, 4  ;;  %s1886_s3 = int_to_ptr.vmem [resolvable:$true] %s1885_s3 }
  0x37   :  { %169 = vmatpush1.msra.mxu0 %v89_v3  ;;  %282 = vmatpush1.msra.mxu1 %v91_v4  ;;  %v77_v9 = vld [vmem:[#allocation5] sm:$0xff]  ;;  %v2307_v10 = vld [vmem:[#allocation11 + $0x1e8] sm:$0xff]  ;;  %v2313_v13 = vld [vmem:[#allocation11 + $0x1f0] sm:$0xff]  ;;  %s2221_s11 = scalar_lea.vmem %s1886_s3, 1024  ;;  %p2226_p7 = scmp.lt.s32.totalorder %s1886_s3, %s1886_s3 }
  0x38   :  { %170 = vmatprep.subr.mxu0 %v86_v5  ;;  %283 = vmatprep.subr.mxu1 %v88_v6  ;;  %3362 = vst [vmem:[#allocation18_spill] sm:$0xff] %v2307_v10  ;;  %v2309_v11 = vld [vmem:[#allocation11 + $0x1f8] sm:$0xff]  ;;  %v2311_v12 = vld [vmem:[#allocation11 + $0x1e0] sm:$0xff]  ;;  %v2317_v14 = vld [vmem:[#allocation11 + $0x1c8] sm:$0xff]  ;;  %p2222_p6 = scmp.ne.s32.totalorder %s1886_s3, %s2221_s11  ;;  %p2227_p8 = scmp.lt.s32.totalorder %s2221_s11, %s2221_s11 }
  0x39   :  { %3363 = vst [vmem:[#allocation19_spill] sm:$0xff] %v2309_v11  ;;  %171 = vmatpush1.msra.mxu0 %v85_v7  ;;  %284 = vmatpush1.msra.mxu1 %v87_v8  ;;  %v2319_v15 = vld [vmem:[#allocation11 + $0x1d8] sm:$0xff]  ;;  %v2325_v16 = vld [vmem:[#allocation11 + $0x1c0] sm:$0xff]  ;;  %v2327_v17 = vld [vmem:[#allocation11 + $0x1d0] sm:$0xff] }
  0x3a   :  { %1899 = vmatmul.mubr.msk.f32.vlgmr.msra.gmra.mxu0 %vm115_vm0, %v77_v9  ;;  %1907 = vmatmul.mubr.msk.f32.vlgmr.msra.gmra.mxu1 %vm115_vm0, %v77_v9  ;;  %v78_v18 = vld [vmem:[#allocation5 + $0x8] sm:$0xff]  ;;  %v2335_v20 = vld [vmem:[#allocation11 + $0x1b8] sm:$0xff]  ;;  %v2341_v22 = vld [vmem:[#allocation11 + $0x1b0] sm:$0xff]  ;;  %p2228_p9 = por %p2227_p8, %p2226_p7 }
  0x3b   :  { %468 = vmatprep.subr.mxu0 %v2307_v10  ;;  %539 = vmatprep.subr.mxu1 %v2309_v11  ;;  %v2333_v19 = vld [vmem:[#allocation11 + $0x1a8] sm:$0xff]  ;;  %v2339_v21 = vld [vmem:[#allocation11 + $0x1a0] sm:$0xff]  ;;  %v2347_v24 = vld [vmem:[#allocation11 + $0x198] sm:$0xff] }
  0x3c   :  { %469 = vmatpush1.msra.mxu0 %v2311_v12  ;;  %540 = vmatpush1.msra.mxu1 %v2313_v13  ;;  %v2345_v23 = vld [vmem:[#allocation11 + $0x188] sm:$0xff]  ;;  %v2353_v25 = vld [vmem:[#allocation11 + $0x180] sm:$0xff]  ;;  %v2355_v26 = vld [vmem:[#allocation11 + $0x190] sm:$0xff]  ;;  %p2229_p10 = pnand %p2228_p9, %p2222_p6 }
  0x3d   :  { %470 = vmatprep.subr.mxu0 %v2317_v14  ;;  %541 = vmatprep.subr.mxu1 %v2319_v15  ;;  %v79_v27 = vld [vmem:[#allocation5 + $0x10] sm:$0xff]  ;;  %v2363_v29 = vld [vmem:[#allocation11 + $0x178] sm:$0xff]  ;;  %v2367_v30 = vld [vmem:[#allocation11 + $0x160] sm:$0xff] }
  0x3e   :  { %210 = vmatprep.mubr.f32.mxu0 %v3274_v0  ;;  %323 = vmatprep.mubr.f32.mxu1 %v3274_v0  ;;  %v2361_v28 = vld [vmem:[#allocation11 + $0x168] sm:$0xff]  ;;  %v2369_v31 = vld [vmem:[#allocation11 + $0x170] sm:$0xff]  ;;  %v2375_v33 = vld [vmem:[#allocation11 + $0x158] sm:$0xff] }
  0x3f   :  { %471 = vmatpush1.msra.mxu0 %v2325_v16  ;;  %542 = vmatpush1.msra.mxu1 %v2327_v17  ;;  %v2373_v32 = vld [vmem:[#allocation11 + $0x148] sm:$0xff]  ;;  %v2381_v34 = vld [vmem:[#allocation11 + $0x140] sm:$0xff]  ;;  %v2383_v35 = vld [vmem:[#allocation11 + $0x150] sm:$0xff] }
  0x40   :  { %1900 = vmatmul.mubr.msk.f32.gmra.mxu0 %vm115_vm0, %v78_v18  ;;  %1908 = vmatmul.mubr.msk.f32.gmra.mxu1 %vm115_vm0, %v78_v18  ;;  %v80_v36 = vld [vmem:[#allocation5 + $0x18] sm:$0xff]  ;;  %v2389_v37 = vld [vmem:[#allocation11 + $0x128] sm:$0xff]  ;;  %v2395_v39 = vld [vmem:[#allocation11 + $0x120] sm:$0xff] }
  0x41   :  { %472 = vmatprep.subr.mxu0 %v2333_v19  ;;  %543 = vmatprep.subr.mxu1 %v2335_v20  ;;  %v2391_v38 = vld [vmem:[#allocation11 + $0x138] sm:$0xff]  ;;  %v2397_v40 = vld [vmem:[#allocation11 + $0x130] sm:$0xff]  ;;  %v2401_v41 = vld [vmem:[#allocation11 + $0x108] sm:$0xff] }
  0x42   :  { %473 = vmatpush1.msra.mxu0 %v2339_v21  ;;  %544 = vmatpush1.msra.mxu1 %v2341_v22  ;;  %v2403_v42 = vld [vmem:[#allocation11 + $0x118] sm:$0xff]  ;;  %v2409_v43 = vld [vmem:[#allocation11 + $0x100] sm:$0xff]  ;;  %v2411_v44 = vld [vmem:[#allocation11 + $0x110] sm:$0xff] }
  0x43   :  { %474 = vmatprep.subr.mxu0 %v2345_v23  ;;  %545 = vmatprep.subr.mxu1 %v2347_v24  ;;  %v81_v45 = vld [vmem:[#allocation5 + $0x20] sm:$0xff]  ;;  %v2417_v46 = vld [vmem:[#allocation11 + $0xe8] sm:$0xff]  ;;  %v2425_v49 = vld [vmem:[#allocation11 + $0xf0] sm:$0xff] }
  0x44   :  { %216 = vmatprep.mubr.f32.mxu0 %v3274_v0  ;;  %329 = vmatprep.mubr.f32.mxu1 %v3274_v0  ;;  %v2419_v47 = vld [vmem:[#allocation11 + $0xf8] sm:$0xff]  ;;  %v2423_v48 = vld [vmem:[#allocation11 + $0xe0] sm:$0xff]  ;;  %v2429_v50 = vld [vmem:[#allocation11 + $0xc8] sm:$0xff] }
  0x45   :  { %475 = vmatpush1.msra.mxu0 %v2353_v25  ;;  %546 = vmatpush1.msra.mxu1 %v2355_v26  ;;  %v2431_v51 = vld [vmem:[#allocation11 + $0xd8] sm:$0xff]  ;;  %v2437_v52 = vld [vmem:[#allocation11 + $0xc0] sm:$0xff]  ;;  %v2439_v53 = vld [vmem:[#allocation11 + $0xd0] sm:$0xff] }
  0x46   :  { %1901 = vmatmul.mubr.msk.f32.gmra.mxu0 %vm115_vm0, %v79_v27  ;;  %1909 = vmatmul.mubr.msk.f32.gmra.mxu1 %vm115_vm0, %v79_v27  ;;  %v82_v54 = vld [vmem:[#allocation5 + $0x28] sm:$0xff]  ;;  %v2447_v56 = vld [vmem:[#allocation11 + $0xb8] sm:$0xff]  ;;  %v2453_v58 = vld [vmem:[#allocation11 + $0xb0] sm:$0xff] }
  0x47   :  { %476 = vmatprep.subr.mxu0 %v2361_v28  ;;  %547 = vmatprep.subr.mxu1 %v2363_v29  ;;  %v2445_v55 = vld [vmem:[#allocation11 + $0xa8] sm:$0xff]  ;;  %v2451_v57 = vld [vmem:[#allocation11 + $0xa0] sm:$0xff]  ;;  %v2459_v60 = vld [vmem:[#allocation11 + $0x98] sm:$0xff] }
  0x48   :  { %477 = vmatpush1.msra.mxu0 %v2367_v30  ;;  %548 = vmatpush1.msra.mxu1 %v2369_v31  ;;  %v2457_v59 = vld [vmem:[#allocation11 + $0x88] sm:$0xff]  ;;  %3365 = vst [vmem:[#allocation21_spill] sm:$0xff] %v2459_v60  ;;  %v2465_v61 = vld [vmem:[#allocation11 + $0x80] sm:$0xff]  ;;  %v2467_v62 = vld [vmem:[#allocation11 + $0x90] sm:$0xff] }
  0x49   :  { %478 = vmatprep.subr.mxu0 %v2373_v32  ;;  %549 = vmatprep.subr.mxu1 %v2375_v33  ;;  %3364 = vst [vmem:[#allocation20_spill] sm:$0xff] %v2457_v59  ;;  %3366 = vst [vmem:[#allocation22_spill] sm:$0xff] %v2465_v61  ;;  %v83_v63 = vld [vmem:[#allocation5 + $0x30] sm:$0xff]  ;;  %v2475_v2 = vld [vmem:[#allocation11 + $0x78] sm:$0xff] }
  0x4a   :  { %222 = vmatprep.mubr.f32.mxu0 %v3274_v0  ;;  %335 = vmatprep.mubr.f32.mxu1 %v3274_v0  ;;  %3367 = vst [vmem:[#allocation23_spill] sm:$0xff] %v2467_v62  ;;  %v2473_v1 = vld [vmem:[#allocation11 + $0x68] sm:$0xff]  ;;  %3369 = vst [vmem:[#allocation25_spill] sm:$0xff] %v2475_v2  ;;  %v2479_v3 = vld [vmem:[#allocation11 + $0x60] sm:$0xff] }
  0x4b   :  { %479 = vmatpush1.msra.mxu0 %v2381_v34  ;;  %550 = vmatpush1.msra.mxu1 %v2383_v35  ;;  %3368 = vst [vmem:[#allocation24_spill] sm:$0xff] %v2473_v1  ;;  %3370 = vst [vmem:[#allocation26_spill] sm:$0xff] %v2479_v3  ;;  %v2481_v4 = vld [vmem:[#allocation11 + $0x70] sm:$0xff]  ;;  %v2485_v5 = vld [vmem:[#allocation11 + $0x48] sm:$0xff] }
  0x4c   :  { %1902 = vmatmul.mubr.msk.f32.gmra.mxu0 %vm115_vm0, %v80_v36  ;;  %1910 = vmatmul.mubr.msk.f32.gmra.mxu1 %vm115_vm0, %v80_v36  ;;  %3371 = vst [vmem:[#allocation27_spill] sm:$0xff] %v2481_v4  ;;  %3372 = vst [vmem:[#allocation28_spill] sm:$0xff] %v2485_v5  ;;  %v2487_v6 = vld [vmem:[#allocation11 + $0x58] sm:$0xff]  ;;  %v2493_v7 = vld [vmem:[#allocation11 + $0x40] sm:$0xff] }
  0x4d   :  { %480 = vmatprep.subr.mxu0 %v2389_v37  ;;  %551 = vmatprep.subr.mxu1 %v2391_v38  ;;  %3373 = vst [vmem:[#allocation29_spill] sm:$0xff] %v2487_v6  ;;  %3374 = vst [vmem:[#allocation30_spill] sm:$0xff] %v2493_v7  ;;  %v2495_v8 = vld [vmem:[#allocation11 + $0x50] sm:$0xff]  ;;  %v2501_v18 = vld [vmem:[#allocation11 + $0x28] sm:$0xff] }
  0x4e   :  { %481 = vmatpush1.msra.mxu0 %v2395_v39  ;;  %552 = vmatpush1.msra.mxu1 %v2397_v40  ;;  %3375 = vst [vmem:[#allocation31_spill] sm:$0xff] %v2495_v8  ;;  %v84_v9 = vld [vmem:[#allocation5 + $0x38] sm:$0xff]  ;;  %3376 = vst [vmem:[#allocation32_spill] sm:$0xff] %v2501_v18  ;;  %v2507_v36 = vld [vmem:[#allocation11 + $0x20] sm:$0xff] }
  0x4f   :  { %482 = vmatprep.subr.mxu0 %v2401_v41  ;;  %553 = vmatprep.subr.mxu1 %v2403_v42  ;;  %v2503_v27 = vld [vmem:[#allocation11 + $0x38] sm:$0xff]  ;;  %3378 = vst [vmem:[#allocation34_spill] sm:$0xff] %v2507_v36 }
  0x50   :  { %228 = vmatprep.mubr.f32.mxu0 %v3274_v0  ;;  %341 = vmatprep.mubr.f32.mxu1 %v3274_v0  ;;  %3377 = vst [vmem:[#allocation33_spill] sm:$0xff] %v2503_v27 }
  0x51   :  { %483 = vmatpush1.msra.mxu0 %v2409_v43  ;;  %554 = vmatpush1.msra.mxu1 %v2411_v44 }
  0x52   :  { %1903 = vmatmul.mubr.msk.f32.gmra.mxu0 %vm115_vm0, %v81_v45  ;;  %1911 = vmatmul.mubr.msk.f32.gmra.mxu1 %vm115_vm0, %v81_v45  ;;  %v2509_v45 = vld [vmem:[#allocation11 + $0x30] sm:$0xff] }
  0x53   :  { %484 = vmatprep.subr.mxu0 %v2417_v46  ;;  %555 = vmatprep.subr.mxu1 %v2419_v47  ;;  %3379 = vst [vmem:[#allocation35_spill] sm:$0xff] %v2509_v45 }
  0x54   :  { %485 = vmatpush1.msra.mxu0 %v2423_v48  ;;  %556 = vmatpush1.msra.mxu1 %v2425_v49 }
  0x55   :  { %486 = vmatprep.subr.mxu0 %v2429_v50  ;;  %557 = vmatprep.subr.mxu1 %v2431_v51 }
  0x56   :  { %234 = vmatprep.mubr.f32.mxu0 %v3274_v0  ;;  %347 = vmatprep.mubr.f32.mxu1 %v3274_v0 }
  0x57   :  { %487 = vmatpush1.msra.mxu0 %v2437_v52  ;;  %558 = vmatpush1.msra.mxu1 %v2439_v53 }
  0x58   :  { %1904 = vmatmul.mubr.msk.f32.gmra.mxu0 %vm115_vm0, %v82_v54  ;;  %1912 = vmatmul.mubr.msk.f32.gmra.mxu1 %vm115_vm0, %v82_v54  ;;  %v2513_v54 = vld [vmem:[#allocation11 + $0x8] sm:$0xff] }
  0x59   :  { %488 = vmatprep.subr.mxu0 %v2445_v55  ;;  %559 = vmatprep.subr.mxu1 %v2447_v56  ;;  %3380 = vst [vmem:[#allocation36_spill] sm:$0xff] %v2513_v54 }
  0x5a   :  { %489 = vmatpush1.msra.mxu0 %v2451_v57  ;;  %560 = vmatpush1.msra.mxu1 %v2453_v58 }
  0x5b   :  { %490 = vmatprep.subr.mxu0 %v2457_v59  ;;  %561 = vmatprep.subr.mxu1 %v2459_v60 }
  0x5c   :  { %240 = vmatprep.mubr.f32.mxu0 %v3274_v0  ;;  %353 = vmatprep.mubr.f32.mxu1 %v3274_v0 }
  0x5d   :  { %491 = vmatpush1.msra.mxu0 %v2465_v61  ;;  %562 = vmatpush1.msra.mxu1 %v2467_v62 }
  0x5e   :  { %1905 = vmatmul.mubr.msk.f32.gmra.mxu0 %vm115_vm0, %v83_v63  ;;  %1913 = vmatmul.mubr.msk.f32.gmra.mxu1 %vm115_vm0, %v83_v63  ;;  %v2515_v63 = vld [vmem:[#allocation11 + $0x18] sm:$0xff] }
  0x5f   :  { %492 = vmatprep.subr.mxu0 %v2473_v1  ;;  %563 = vmatprep.subr.mxu1 %v2475_v2  ;;  %3381 = vst [vmem:[#allocation37_spill] sm:$0xff] %v2515_v63 }
  0x60   :  { %493 = vmatpush1.msra.mxu0 %v2479_v3  ;;  %564 = vmatpush1.msra.mxu1 %v2481_v4 }
  0x61   :  { %494 = vmatprep.subr.mxu0 %v2485_v5  ;;  %565 = vmatprep.subr.mxu1 %v2487_v6 }
  0x62   :  { %246 = vmatprep.mubr.f32.mxu0 %v3274_v0  ;;  %359 = vmatprep.mubr.f32.mxu1 %v3274_v0  ;;  %v2519_v0 = vld [vmem:[#allocation11] sm:$0xff] }
  0x63   :  { %495 = vmatpush1.msra.mxu0 %v2493_v7  ;;  %566 = vmatpush1.msra.mxu1 %v2495_v8  ;;  %3382 = vst [vmem:[#allocation38_spill] sm:$0xff] %v2519_v0  ;;  %v2523_v8 = vld [vmem:[#allocation11 + $0x10] sm:$0xff] }
  0x64   :  { %1906 = vmatmul.mubr.msk.f32.gmra.mxu0 %vm115_vm0, %v84_v9  ;;  %1914 = vmatmul.mubr.msk.f32.gmra.mxu1 %vm115_vm0, %v84_v9  ;;  %3383 = vst [vmem:[#allocation39_spill] sm:$0xff] %v2523_v8  ;;  %v3384_v9 = vmov 0.0  }
  0x65   :  { %496 = vmatprep.subr.mxu0 %v2501_v18  ;;  %567 = vmatprep.subr.mxu1 %v2503_v27 }
  0x66   :  { %497 = vmatpush1.msra.mxu0 %v2507_v36  ;;  %568 = vmatpush1.msra.mxu1 %v2509_v45 }
  0x67   :  { %498 = vmatprep.subr.mxu0 %v2513_v54  ;;  %569 = vmatprep.subr.mxu1 %v2515_v63 }
  0x68   :  { %499 = vmatpush1.msra.mxu0 %v2519_v0  ;;  %532 = vmatprep.mubr.f32.mxu0 %v3384_v9 }
  0x69   :  { %570 = vmatpush1.msra.mxu1 %v2523_v8  ;;  %603 = vmatprep.mubr.f32.mxu1 %v3384_v9 }
  0x6a   :  { %533 = vmatmul.mubr.f32.vlgmr.msra.gmra.mxu0 %v3384_v9  ;;  %604 = vmatmul.mubr.f32.vlgmr.msra.gmra.mxu1 %v3384_v9 }
  0x6b   :  { %644 = vmatprep.subr.mxu0 %v2307_v10  ;;  %715 = vmatprep.subr.mxu1 %v2309_v11 }
  0x6c   :  { %645 = vmatpush1.msra.mxu0 %v2311_v12  ;;  %716 = vmatpush1.msra.mxu1 %v2313_v13 }
  0x6d   :  { %646 = vmatprep.subr.mxu0 %v2317_v14  ;;  %717 = vmatprep.subr.mxu1 %v2319_v15 }
  0x6e   :  { %647 = vmatpush1.msra.mxu0 %v2325_v16  ;;  %718 = vmatpush1.msra.mxu1 %v2327_v17 }
  0x6f   :  { %648 = vmatprep.subr.mxu0 %v2333_v19  ;;  %719 = vmatprep.subr.mxu1 %v2335_v20 }
  0x70   :  { %649 = vmatpush1.msra.mxu0 %v2339_v21  ;;  %720 = vmatpush1.msra.mxu1 %v2341_v22 }
  0x71   :  { %650 = vmatprep.subr.mxu0 %v2345_v23  ;;  %721 = vmatprep.subr.mxu1 %v2347_v24 }
  0x72   :  { %651 = vmatpush1.msra.mxu0 %v2353_v25  ;;  %722 = vmatpush1.msra.mxu1 %v2355_v26 }
  0x73   :  { %652 = vmatprep.subr.mxu0 %v2361_v28  ;;  %723 = vmatprep.subr.mxu1 %v2363_v29 }
  0x74   :  { %653 = vmatpush1.msra.mxu0 %v2367_v30  ;;  %724 = vmatpush1.msra.mxu1 %v2369_v31 }
  0x75   :  { %654 = vmatprep.subr.mxu0 %v2373_v32  ;;  %725 = vmatprep.subr.mxu1 %v2375_v33 }
  0x76   :  { %655 = vmatpush1.msra.mxu0 %v2381_v34  ;;  %726 = vmatpush1.msra.mxu1 %v2383_v35 }
  0x77   :  { %656 = vmatprep.subr.mxu0 %v2389_v37  ;;  %727 = vmatprep.subr.mxu1 %v2391_v38 }
  0x78   :  { %657 = vmatpush1.msra.mxu0 %v2395_v39  ;;  %728 = vmatpush1.msra.mxu1 %v2397_v40 }
  0x79   :  { %658 = vmatprep.subr.mxu0 %v2401_v41  ;;  %729 = vmatprep.subr.mxu1 %v2403_v42 }
  0x7a   :  { %659 = vmatpush1.msra.mxu0 %v2409_v43  ;;  %730 = vmatpush1.msra.mxu1 %v2411_v44 }
  0x7b   :  { %660 = vmatprep.subr.mxu0 %v2417_v46  ;;  %731 = vmatprep.subr.mxu1 %v2419_v47 }
  0x7c   :  { %661 = vmatpush1.msra.mxu0 %v2423_v48  ;;  %732 = vmatpush1.msra.mxu1 %v2425_v49 }
  0x7d   :  { %662 = vmatprep.subr.mxu0 %v2429_v50  ;;  %733 = vmatprep.subr.mxu1 %v2431_v51 }
  0x7e   :  { %663 = vmatpush1.msra.mxu0 %v2437_v52  ;;  %734 = vmatpush1.msra.mxu1 %v2439_v53 }
  0x7f   :  { %664 = vmatprep.subr.mxu0 %v2445_v55  ;;  %735 = vmatprep.subr.mxu1 %v2447_v56 }
  0x80   :  { %665 = vmatpush1.msra.mxu0 %v2451_v57  ;;  %736 = vmatpush1.msra.mxu1 %v2453_v58 }
  0x81   :  { %666 = vmatprep.subr.mxu0 %v2457_v59  ;;  %737 = vmatprep.subr.mxu1 %v2459_v60  ;;  %v3385_v59 = vld [vmem:[#allocation31_spill] sm:$0xff] }
  0x82   :  { %667 = vmatpush1.msra.mxu0 %v2465_v61  ;;  %738 = vmatpush1.msra.mxu1 %v2467_v62 }
  0x83   :  { %668 = vmatprep.subr.mxu0 %v2473_v1  ;;  %739 = vmatprep.subr.mxu1 %v2475_v2 }
  0x84   :  { %669 = vmatpush1.msra.mxu0 %v2479_v3  ;;  %740 = vmatpush1.msra.mxu1 %v2481_v4 }
  0x85   :  { %670 = vmatprep.subr.mxu0 %v2485_v5  ;;  %741 = vmatprep.subr.mxu1 %v2487_v6 }
  0x86   :  { %671 = vmatpush1.msra.mxu0 %v2493_v7  ;;  %742 = vmatpush1.msra.mxu1 %v3385_v59  ;;  %v93_v59 = vld [vmem:[#allocation10] sm:$0xf] }
  0x87   :  { %672 = vmatprep.subr.mxu0 %v2501_v18  ;;  %743 = vmatprep.subr.mxu1 %v2503_v27  ;;  %v95_v27 = vlaneseq }
  0x88   :  { %673 = vmatpush1.msra.mxu0 %v2507_v36  ;;  %744 = vmatpush1.msra.mxu1 %v2509_v45 }
  0x89   :  { %674 = vmatprep.subr.mxu0 %v2513_v54  ;;  %745 = vmatprep.subr.mxu1 %v2515_v63  ;;  %v96_v36 = vshrl.u32 %v95_v27, 7 }
  0x8a   :  { %675 = vmatpush1.msra.mxu0 %v2519_v0  ;;  %708 = vmatprep.mubr.f32.mxu0 %v3384_v9 }
  0x8b   :  { %746 = vmatpush1.msra.mxu1 %v2523_v8  ;;  %779 = vmatprep.mubr.f32.mxu1 %v3384_v9  ;;  %v97_v54 = vsub.s32 0, %v96_v36  ;;  %v105_v63 = vsub.s32 2, %v96_v36  ;;  %v101_v8 = vsub.s32 1, %v96_v36  ;;  %v109_v6 = vsub.s32 3, %v96_v36 }
  0x8c   :  { %821 = vmatprep.subr.mxu0 %v2307_v10  ;;  %892 = vmatprep.subr.mxu1 %v2309_v11 }
  0x8d   :  { %v98_v9 = vrot.slane %v93_v59, %v97_v54  ;;  %v2609_v5 = vrot.slane %v93_v59, %v105_v63  ;;  %v102_v4 = vrot.slane %v93_v59, %v101_v8  ;;  %v2611_v27 = vrot.slane %v93_v59, %v109_v6 }
  0xfa   :  { %v2601_v18 = vpop.f32.mrf.mxu0  ;;  %v2603_v45 = vpop.f32.mrf.mxu1 }
  0xfc   :  { %v2605_v0 = vpop.f32.mrf.mxu0  ;;  %v2607_v7 = vpop.f32.mrf.mxu1 }
 0x100   :  { %v212_v10 = vpop.f32.mrf.mxu0  ;;  %v325_v11 = vpop.f32.mrf.mxu1 }
 0x101   :  { %v2613_v3 = vadd.f32 %v212_v10, %v98_v9  ;;  %v2616_v2 = vadd.f32 %v325_v11, %v2609_v5 }
 0x102   :  { %v214_v1 = vpop.f32.mrf.mxu0  ;;  %v327_v62 = vpop.f32.mrf.mxu1 }
 0x103   :  { %3386 = vst [vmem:[#allocation40_spill] sm:$0xff] %v2613_v3  ;;  %3387 = vst [vmem:[#allocation41_spill] sm:$0xff] %v2616_v2  ;;  %v2618_v61 = vadd.f32 %v214_v1, %v102_v4  ;;  %v2621_v60 = vadd.f32 %v327_v62, %v2611_v27 }
 0x105   :  { %3388 = vst [vmem:[#allocation42_spill] sm:$0xff] %v2618_v61  ;;  %3389 = vst [vmem:[#allocation43_spill] sm:$0xff] %v2621_v60 }
 0x106   :  { %v218_v36 = vpop.f32.mrf.mxu0  ;;  %v331_v54 = vpop.f32.mrf.mxu1 }
 0x107   :  { %v2623_v63 = vadd.f32 %v218_v36, %v98_v9  ;;  %v2626_v8 = vadd.f32 %v331_v54, %v2609_v5 }
 0x108   :  { %v220_v59 = vpop.f32.mrf.mxu0  ;;  %v333_v10 = vpop.f32.mrf.mxu1 }
 0x109   :  { %3390 = vst [vmem:[#allocation44_spill] sm:$0xff] %v2623_v63  ;;  %3391 = vst [vmem:[#allocation45_spill] sm:$0xff] %v2626_v8  ;;  %v2628_v6 = vadd.f32 %v220_v59, %v102_v4  ;;  %v2631_v11 = vadd.f32 %v333_v10, %v2611_v27 }
 0x10b   :  { %3392 = vst [vmem:[#allocation46_spill] sm:$0xff] %v2628_v6  ;;  %3393 = vst [vmem:[#allocation47_spill] sm:$0xff] %v2631_v11 }
 0x10c   :  { %v224_v2 = vpop.f32.mrf.mxu0  ;;  %v337_v1 = vpop.f32.mrf.mxu1 }
 0x10d   :  { %v2633_v61 = vadd.f32 %v224_v2, %v98_v9  ;;  %v2636_v62 = vadd.f32 %v337_v1, %v2609_v5 }
 0x10e   :  { %v226_v60 = vpop.f32.mrf.mxu0  ;;  %v339_v36 = vpop.f32.mrf.mxu1 }
 0x10f   :  { %3394 = vst [vmem:[#allocation48_spill] sm:$0xff] %v2633_v61  ;;  %3395 = vst [vmem:[#allocation49_spill] sm:$0xff] %v2636_v62  ;;  %v2638_v63 = vadd.f32 %v226_v60, %v102_v4  ;;  %v2641_v54 = vadd.f32 %v339_v36, %v2611_v27 }
 0x111   :  { %3396 = vst [vmem:[#allocation50_spill] sm:$0xff] %v2638_v63  ;;  %3397 = vst [vmem:[#allocation51_spill] sm:$0xff] %v2641_v54 }
 0x112   :  { %v230_v8 = vpop.f32.mrf.mxu0  ;;  %v343_v59 = vpop.f32.mrf.mxu1 }
 0x113   :  { %v2643_v6 = vadd.f32 %v230_v8, %v98_v9  ;;  %v2646_v10 = vadd.f32 %v343_v59, %v2609_v5 }
 0x114   :  { %v232_v11 = vpop.f32.mrf.mxu0  ;;  %v345_v2 = vpop.f32.mrf.mxu1 }
 0x115   :  { %3398 = vst [vmem:[#allocation52_spill] sm:$0xff] %v2643_v6  ;;  %3399 = vst [vmem:[#allocation53_spill] sm:$0xff] %v2646_v10  ;;  %v2648_v61 = vadd.f32 %v232_v11, %v102_v4  ;;  %v2651_v1 = vadd.f32 %v345_v2, %v2611_v27 }
 0x117   :  { %3400 = vst [vmem:[#allocation54_spill] sm:$0xff] %v2648_v61  ;;  %3401 = vst [vmem:[#allocation55_spill] sm:$0xff] %v2651_v1 }
 0x118   :  { %v236_v62 = vpop.f32.mrf.mxu0  ;;  %v349_v60 = vpop.f32.mrf.mxu1 }
 0x119   :  { %v2653_v63 = vadd.f32 %v236_v62, %v98_v9  ;;  %v2656_v36 = vadd.f32 %v349_v60, %v2609_v5 }
 0x11a   :  { %v238_v54 = vpop.f32.mrf.mxu0  ;;  %v351_v8 = vpop.f32.mrf.mxu1 }
 0x11b   :  { %3402 = vst [vmem:[#allocation56_spill] sm:$0xff] %v2653_v63  ;;  %3403 = vst [vmem:[#allocation57_spill] sm:$0xff] %v2656_v36  ;;  %v2658_v6 = vadd.f32 %v238_v54, %v102_v4  ;;  %v2661_v59 = vadd.f32 %v351_v8, %v2611_v27 }
 0x11d   :  { %3404 = vst [vmem:[#allocation58_spill] sm:$0xff] %v2658_v6  ;;  %3405 = vst [vmem:[#allocation59_spill] sm:$0xff] %v2661_v59 }
 0x11e   :  { %v242_v10 = vpop.f32.mrf.mxu0  ;;  %v355_v11 = vpop.f32.mrf.mxu1 }
 0x11f   :  { %v2663_v61 = vadd.f32 %v242_v10, %v98_v9  ;;  %v2666_v2 = vadd.f32 %v355_v11, %v2609_v5 }
 0x120   :  { %v244_v1 = vpop.f32.mrf.mxu0  ;;  %v357_v62 = vpop.f32.mrf.mxu1 }
 0x121   :  { %3406 = vst [vmem:[#allocation60_spill] sm:$0xff] %v2663_v61  ;;  %3407 = vst [vmem:[#allocation61_spill] sm:$0xff] %v2666_v2  ;;  %v2668_v63 = vadd.f32 %v244_v1, %v102_v4  ;;  %v2671_v60 = vadd.f32 %v357_v62, %v2611_v27  ;;  %v207_v1 = vadd.f32 %v2601_v18, %v98_v9 }
 0x122   :  { %v209_v62 = vadd.f32 %v2605_v0, %v102_v4 }
 0x123   :  { %3408 = vst [vmem:[#allocation62_spill] sm:$0xff] %v2668_v63  ;;  %3409 = vst [vmem:[#allocation63_spill] sm:$0xff] %v2671_v60 }
 0x124   :  { %v248_v36 = vpop.f32.mrf.mxu0  ;;  %v361_v54 = vpop.f32.mrf.mxu1 }
 0x125   :  { %v2673_v6 = vadd.f32 %v248_v36, %v98_v9  ;;  %v2676_v8 = vadd.f32 %v361_v54, %v2609_v5 }
 0x126   :  { %v250_v59 = vpop.f32.mrf.mxu0  ;;  %v363_v10 = vpop.f32.mrf.mxu1 }
 0x127   :  { %3410 = vst [vmem:[#allocation64_spill] sm:$0xff] %v2673_v6  ;;  %3411 = vst [vmem:[#allocation65_spill] sm:$0xff] %v2676_v8  ;;  %v2678_v61 = vadd.f32 %v250_v59, %v102_v4  ;;  %v2681_v11 = vadd.f32 %v363_v10, %v2611_v27  ;;  %v322_v59 = vadd.f32 %v2607_v7, %v2611_v27 }
 0x128   :  { %v320_v10 = vadd.f32 %v2603_v45, %v2609_v5 }
 0x129   :  { %3412 = vst [vmem:[#allocation66_spill] sm:$0xff] %v2678_v61  ;;  %3413 = vst [vmem:[#allocation67_spill] sm:$0xff] %v2681_v11 }
 0x12a   :  { %v534_v2 = vpop.f32.mrf.mxu0  ;;  %v605_v6 = vpop.f32.mrf.mxu1 }
 0x12b   :  { %v610_v60 = vadd.f32 %v534_v2, %v207_v1  ;;  %v612_v11 = vadd.f32 %v605_v6, %v320_v10  ;;  %v3414_v6 = vld [vmem:[#allocation20_spill] sm:$0xff]  ;;  %v3419_v10 = vld [vmem:[#allocation25_spill] sm:$0xff] }
 0x12c   :  { %v536_v63 = vpop.f32.mrf.mxu0  ;;  %v607_v8 = vpop.f32.mrf.mxu1 }
 0x12d   :  { %v1915_v3 = vmul.f32 -1.442695, %v610_v60  ;;  %v611_v36 = vadd.f32 %v536_v63, %v209_v62  ;;  %v613_v61 = vadd.f32 %v607_v8, %v322_v59  ;;  %v3418_v59 = vld [vmem:[#allocation24_spill] sm:$0xff] }
 0x12f   :  { %1949 = vpow2.f32 %v1915_v3  ;;  %v1916_v54 = vmul.f32 -1.442695, %v611_v36  ;;  %v1917_v18 = vmul.f32 -1.442695, %v613_v61  ;;  %v3416_v36 = vld [vmem:[#allocation22_spill] sm:$0xff] }
 0x131   :  { %1951 = vpow2.f32 %v1916_v54  ;;  %v3417_v54 = vld [vmem:[#allocation23_spill] sm:$0xff] }
 0x132   :  { %1953 = vpow2.f32 %v1917_v18  ;;  %v3420_v18 = vld [vmem:[#allocation26_spill] sm:$0xff] }
 0x13c   :  { %v1950_v9 = vpop.eup %1949 }
 0x13d   :  { %v617_v0 = vadd.f32 1.0, %v1950_v9  ;;  %v3421_v9 = vld [vmem:[#allocation27_spill] sm:$0xff] }
 0x13e   :  { %v1952_v4 = vpop.eup %1951 }
 0x13f   :  { %1955 = vrcp.f32 %v617_v0  ;;  %v623_v63 = vadd.f32 1.0, %v1952_v4  ;;  %v1954_v3 = vpop.eup %1953  ;;  %v3422_v0 = vld [vmem:[#allocation28_spill] sm:$0xff]  ;;  %v3423_v4 = vld [vmem:[#allocation29_spill] sm:$0xff] }
 0x140   :  { %1957 = vtanh.f32 %v612_v11  ;;  %v630_v62 = vadd.f32 1.0, %v1954_v3  ;;  %v3415_v11 = vld [vmem:[#allocation21_spill] sm:$0xff]  ;;  %v3425_v3 = vld [vmem:[#allocation31_spill] sm:$0xff] }
 0x141   :  { %1959 = vrcp.f32 %v623_v63  ;;  %v3424_v63 = vld [vmem:[#allocation30_spill] sm:$0xff] }
 0x142   :  { %1961 = vrcp.f32 %v630_v62  ;;  %v3429_v62 = vld [vmem:[#allocation35_spill] sm:$0xff] }
 0x14c   :  { %v1956_v2 = vpop.eup %1955 }
 0x14d   :  { %v1958_v60 = vpop.eup %1957 }
 0x14e   :  { %v1960_v1 = vpop.eup %1959  ;;  %v634_v27 = vmul.f32 %v1958_v60, %v1956_v2  ;;  %v3426_v2 = vld [vmem:[#allocation32_spill] sm:$0xff]  ;;  %v3427_v60 = vld [vmem:[#allocation33_spill] sm:$0xff] }
 0x14f   :  { %v633_v7 = vmul.f32 0.0, %v1960_v1  ;;  %v1962_v61 = vpop.eup %1961  ;;  %v3428_v1 = vld [vmem:[#allocation34_spill] sm:$0xff] }
 0x151   :  { %v2689_v8 = vadd.f32 %v634_v27, %v633_v7  ;;  %v3430_v7 = vld [vmem:[#allocation36_spill] sm:$0xff]  ;;  %v3431_v27 = vld [vmem:[#allocation37_spill] sm:$0xff] }
 0x153   :  { %1963 = vtanh.f32 %v2689_v8 }
 0x160   :  { %v1964_v5 = vpop.eup %1963 }
 0x161   :  { %v637_v45 = vmul.f32 %v1964_v5, %v1962_v61  ;;  %v3432_v61 = vld [vmem:[#allocation38_spill] sm:$0xff]  ;;  %v3433_v5 = vmov 0.0  }
 0x163   :  { %638 = vst [vmem:[#allocation13] sm:$0xff] %v637_v45  ;;  %709 = vmatmul.mubr.f32.vlgmr.msra.gmra.mxu0 %v637_v45  ;;  %780 = vmatmul.mubr.f32.vlgmr.msra.gmra.mxu1 %v637_v45  ;;  %v3434_v45 = vld [vmem:[#allocation39_spill] sm:$0xff] }
 0x164   :  { %822 = vmatpush1.msra.mxu0 %v2311_v12  ;;  %893 = vmatpush1.msra.mxu1 %v2313_v13 }
 0x165   :  { %823 = vmatprep.subr.mxu0 %v2317_v14  ;;  %894 = vmatprep.subr.mxu1 %v2319_v15 }
 0x166   :  { %824 = vmatpush1.msra.mxu0 %v2325_v16  ;;  %895 = vmatpush1.msra.mxu1 %v2327_v17 }
 0x167   :  { %825 = vmatprep.subr.mxu0 %v2333_v19  ;;  %896 = vmatprep.subr.mxu1 %v2335_v20 }
 0x168   :  { %826 = vmatpush1.msra.mxu0 %v2339_v21  ;;  %897 = vmatpush1.msra.mxu1 %v2341_v22 }
 0x169   :  { %827 = vmatprep.subr.mxu0 %v2345_v23  ;;  %898 = vmatprep.subr.mxu1 %v2347_v24 }
 0x16a   :  { %828 = vmatpush1.msra.mxu0 %v2353_v25  ;;  %899 = vmatpush1.msra.mxu1 %v2355_v26 }
 0x16b   :  { %829 = vmatprep.subr.mxu0 %v2361_v28  ;;  %900 = vmatprep.subr.mxu1 %v2363_v29 }
 0x16c   :  { %830 = vmatpush1.msra.mxu0 %v2367_v30  ;;  %901 = vmatpush1.msra.mxu1 %v2369_v31 }
 0x16d   :  { %831 = vmatprep.subr.mxu0 %v2373_v32  ;;  %902 = vmatprep.subr.mxu1 %v2375_v33 }
 0x16e   :  { %832 = vmatpush1.msra.mxu0 %v2381_v34  ;;  %903 = vmatpush1.msra.mxu1 %v2383_v35 }
 0x16f   :  { %833 = vmatprep.subr.mxu0 %v2389_v37  ;;  %904 = vmatprep.subr.mxu1 %v2391_v38 }
 0x170   :  { %834 = vmatpush1.msra.mxu0 %v2395_v39  ;;  %905 = vmatpush1.msra.mxu1 %v2397_v40 }
 0x171   :  { %835 = vmatprep.subr.mxu0 %v2401_v41  ;;  %906 = vmatprep.subr.mxu1 %v2403_v42 }
 0x172   :  { %836 = vmatpush1.msra.mxu0 %v2409_v43  ;;  %907 = vmatpush1.msra.mxu1 %v2411_v44 }
 0x173   :  { %837 = vmatprep.subr.mxu0 %v2417_v46  ;;  %908 = vmatprep.subr.mxu1 %v2419_v47 }
 0x174   :  { %838 = vmatpush1.msra.mxu0 %v2423_v48  ;;  %909 = vmatpush1.msra.mxu1 %v2425_v49 }
 0x175   :  { %839 = vmatprep.subr.mxu0 %v2429_v50  ;;  %910 = vmatprep.subr.mxu1 %v2431_v51 }
 0x176   :  { %840 = vmatpush1.msra.mxu0 %v2437_v52  ;;  %911 = vmatpush1.msra.mxu1 %v2439_v53 }
 0x177   :  { %841 = vmatprep.subr.mxu0 %v2445_v55  ;;  %912 = vmatprep.subr.mxu1 %v2447_v56 }
 0x178   :  { %842 = vmatpush1.msra.mxu0 %v2451_v57  ;;  %913 = vmatpush1.msra.mxu1 %v2453_v58 }
 0x179   :  { %843 = vmatprep.subr.mxu0 %v3414_v6  ;;  %914 = vmatprep.subr.mxu1 %v3415_v11 }
 0x17a   :  { %844 = vmatpush1.msra.mxu0 %v3416_v36  ;;  %915 = vmatpush1.msra.mxu1 %v3417_v54 }
 0x17b   :  { %845 = vmatprep.subr.mxu0 %v3418_v59  ;;  %916 = vmatprep.subr.mxu1 %v3419_v10  ;;  %v3440_v10 = vld [vmem:[#allocation41_spill] sm:$0xff] }
 0x17c   :  { %846 = vmatpush1.msra.mxu0 %v3420_v18  ;;  %917 = vmatpush1.msra.mxu1 %v3421_v9  ;;  %v3439_v18 = vld [vmem:[#allocation43_spill] sm:$0xff] }
 0x17d   :  { %847 = vmatprep.subr.mxu0 %v3422_v0  ;;  %918 = vmatprep.subr.mxu1 %v3423_v4 }
 0x17e   :  { %848 = vmatpush1.msra.mxu0 %v3424_v63  ;;  %919 = vmatpush1.msra.mxu1 %v3425_v3  ;;  %v3435_v3 = vld [vmem:[#allocation18_spill] sm:$0xff] }
 0x17f   :  { %849 = vmatprep.subr.mxu0 %v3426_v2  ;;  %920 = vmatprep.subr.mxu1 %v3427_v60  ;;  %v3436_v2 = vld [vmem:[#allocation19_spill] sm:$0xff] }
 0x180   :  { %850 = vmatpush1.msra.mxu0 %v3428_v1  ;;  %921 = vmatpush1.msra.mxu1 %v3429_v62  ;;  %v3437_v1 = vld [vmem:[#allocation40_spill] sm:$0xff] }
 0x181   :  { %851 = vmatprep.subr.mxu0 %v3430_v7  ;;  %922 = vmatprep.subr.mxu1 %v3431_v27  ;;  %v3438_v7 = vld [vmem:[#allocation42_spill] sm:$0xff] }
 0x182   :  { %852 = vmatpush1.msra.mxu0 %v3432_v61  ;;  %885 = vmatprep.mubr.f32.mxu0 %v3433_v5 }
 0x183   :  { %923 = vmatpush1.msra.mxu1 %v3434_v45  ;;  %956 = vmatprep.mubr.f32.mxu1 %v3433_v5 }
 0x184   :  { %998 = vmatprep.subr.mxu0 %v3435_v3  ;;  %1069 = vmatprep.subr.mxu1 %v3436_v2 }
 0x223   :  { %v710_v60 = vpop.f32.mrf.mxu0  ;;  %v781_v27 = vpop.f32.mrf.mxu1 }
 0x224   :  { %v786_v63 = vadd.f32 %v710_v60, %v3437_v1  ;;  %v788_v5 = vadd.f32 %v781_v27, %v3440_v10 }
 0x225   :  { %v712_v62 = vpop.f32.mrf.mxu0  ;;  %v783_v9 = vpop.f32.mrf.mxu1 }
 0x226   :  { %v1918_v4 = vmul.f32 -1.442695, %v786_v63  ;;  %v787_v0 = vadd.f32 %v712_v62, %v3438_v7  ;;  %v789_v45 = vadd.f32 %v783_v9, %v3439_v18 }
 0x228   :  { %1965 = vpow2.f32 %v1918_v4  ;;  %v1919_v61 = vmul.f32 -1.442695, %v787_v0  ;;  %v1920_v59 = vmul.f32 -1.442695, %v789_v45  ;;  %v3464_v45 = vld [vmem:[#allocation45_spill] sm:$0xff] }
 0x22a   :  { %1967 = vpow2.f32 %v1919_v61 }
 0x22b   :  { %1969 = vtanh.f32 %v788_v5 }
 0x22c   :  { %1971 = vpow2.f32 %v1920_v59  ;;  %v3463_v59 = vld [vmem:[#allocation47_spill] sm:$0xff] }
 0x235   :  { %v1966_v3 = vpop.eup %1965 }
 0x236   :  { %v793_v54 = vadd.f32 1.0, %v1966_v3 }
 0x237   :  { %v1968_v2 = vpop.eup %1967 }
 0x238   :  { %1973 = vrcp.f32 %v793_v54  ;;  %v799_v60 = vadd.f32 1.0, %v1968_v2  ;;  %v1970_v63 = vpop.eup %1969 }
 0x239   :  { %v1972_v1 = vpop.eup %1971 }
 0x23a   :  { %1975 = vrcp.f32 %v799_v60  ;;  %v806_v7 = vadd.f32 1.0, %v1972_v1 }
 0x23c   :  { %1977 = vrcp.f32 %v806_v7 }
 0x245   :  { %v1974_v4 = vpop.eup %1973 }
 0x246   :  { %v810_v62 = vmul.f32 %v1974_v4, %v1970_v63 }
 0x247   :  { %v1976_v0 = vpop.eup %1975 }
 0x248   :  { %v809_v61 = vmul.f32 %v1976_v0, %v2689_v8 }
 0x249   :  { %v1978_v10 = vpop.eup %1977 }
 0x24a   :  { %v2763_v18 = vadd.f32 %v810_v62, %v809_v61 }
 0x24c   :  { %1979 = vtanh.f32 %v2763_v18 }
 0x259   :  { %v1980_v9 = vpop.eup %1979 }
 0x25a   :  { %v813_v27 = vmul.f32 %v1980_v9, %v1978_v10 }
 0x25c   :  { %815 = vst [vmem:[#allocation13 + $0x8] sm:$0xff] %v813_v27  ;;  %886 = vmatmul.mubr.f32.vlgmr.msra.gmra.mxu0 %v813_v27  ;;  %957 = vmatmul.mubr.f32.vlgmr.msra.gmra.mxu1 %v813_v27 }
 0x25d   :  { %999 = vmatpush1.msra.mxu0 %v2311_v12  ;;  %1070 = vmatpush1.msra.mxu1 %v2313_v13  ;;  %v3441_v12 = vld [vmem:[#allocation23_spill] sm:$0xff]  ;;  %v3442_v13 = vld [vmem:[#allocation24_spill] sm:$0xff] }
 0x25e   :  { %1000 = vmatprep.subr.mxu0 %v2317_v14  ;;  %1071 = vmatprep.subr.mxu1 %v2319_v15  ;;  %v3443_v14 = vld [vmem:[#allocation25_spill] sm:$0xff]  ;;  %v3444_v15 = vld [vmem:[#allocation26_spill] sm:$0xff] }
 0x25f   :  { %1001 = vmatpush1.msra.mxu0 %v2325_v16  ;;  %1072 = vmatpush1.msra.mxu1 %v2327_v17  ;;  %v3445_v16 = vld [vmem:[#allocation27_spill] sm:$0xff]  ;;  %v3446_v17 = vld [vmem:[#allocation28_spill] sm:$0xff] }
 0x260   :  { %1002 = vmatprep.subr.mxu0 %v2333_v19  ;;  %1073 = vmatprep.subr.mxu1 %v2335_v20  ;;  %v3447_v19 = vld [vmem:[#allocation29_spill] sm:$0xff]  ;;  %v3448_v20 = vld [vmem:[#allocation30_spill] sm:$0xff] }
 0x261   :  { %1003 = vmatpush1.msra.mxu0 %v2339_v21  ;;  %1074 = vmatpush1.msra.mxu1 %v2341_v22  ;;  %v3449_v21 = vld [vmem:[#allocation31_spill] sm:$0xff]  ;;  %v3450_v22 = vld [vmem:[#allocation32_spill] sm:$0xff] }
 0x262   :  { %1004 = vmatprep.subr.mxu0 %v2345_v23  ;;  %1075 = vmatprep.subr.mxu1 %v2347_v24  ;;  %v3451_v23 = vld [vmem:[#allocation33_spill] sm:$0xff]  ;;  %v3452_v24 = vld [vmem:[#allocation34_spill] sm:$0xff] }
 0x263   :  { %1005 = vmatpush1.msra.mxu0 %v2353_v25  ;;  %1076 = vmatpush1.msra.mxu1 %v2355_v26  ;;  %v3453_v25 = vld [vmem:[#allocation35_spill] sm:$0xff]  ;;  %v3454_v26 = vld [vmem:[#allocation36_spill] sm:$0xff] }
 0x264   :  { %1006 = vmatprep.subr.mxu0 %v2361_v28  ;;  %1077 = vmatprep.subr.mxu1 %v2363_v29  ;;  %v3455_v28 = vld [vmem:[#allocation37_spill] sm:$0xff]  ;;  %v3456_v29 = vld [vmem:[#allocation38_spill] sm:$0xff] }
 0x265   :  { %1007 = vmatpush1.msra.mxu0 %v2367_v30  ;;  %1078 = vmatpush1.msra.mxu1 %v2369_v31  ;;  %v3457_v30 = vmov 0.0   ;;  %v3458_v31 = vld [vmem:[#allocation39_spill] sm:$0xff] }
 0x266   :  { %1008 = vmatprep.subr.mxu0 %v2373_v32  ;;  %1079 = vmatprep.subr.mxu1 %v2375_v33  ;;  %v2830_v32 = vld [vmem:[#allocation11 + $0x1e8] sm:$0xff]  ;;  %v2833_v33 = vld [vmem:[#allocation11 + $0x1f8] sm:$0xff] }
 0x267   :  { %1009 = vmatpush1.msra.mxu0 %v2381_v34  ;;  %1080 = vmatpush1.msra.mxu1 %v2383_v35  ;;  %3459 = vst [vmem:[#allocation20_spill] sm:$0xff] %v2830_v32  ;;  %3460 = vst [vmem:[#allocation21_spill] sm:$0xff] %v2833_v33  ;;  %v3461_v35 = vld [vmem:[#allocation44_spill] sm:$0xff] }
 0x268   :  { %1010 = vmatprep.subr.mxu0 %v2389_v37  ;;  %1081 = vmatprep.subr.mxu1 %v2391_v38 }
 0x269   :  { %1011 = vmatpush1.msra.mxu0 %v2395_v39  ;;  %1082 = vmatpush1.msra.mxu1 %v2397_v40  ;;  %v3462_v40 = vld [vmem:[#allocation46_spill] sm:$0xff] }
 0x26a   :  { %1012 = vmatprep.subr.mxu0 %v2401_v41  ;;  %1083 = vmatprep.subr.mxu1 %v2403_v42 }
 0x26b   :  { %1013 = vmatpush1.msra.mxu0 %v2409_v43  ;;  %1084 = vmatpush1.msra.mxu1 %v2411_v44 }
 0x26c   :  { %1014 = vmatprep.subr.mxu0 %v2417_v46  ;;  %1085 = vmatprep.subr.mxu1 %v2419_v47 }
 0x26d   :  { %1015 = vmatpush1.msra.mxu0 %v2423_v48  ;;  %1086 = vmatpush1.msra.mxu1 %v2425_v49 }
 0x26e   :  { %1016 = vmatprep.subr.mxu0 %v2429_v50  ;;  %1087 = vmatprep.subr.mxu1 %v2431_v51 }
 0x26f   :  { %1017 = vmatpush1.msra.mxu0 %v2437_v52  ;;  %1088 = vmatpush1.msra.mxu1 %v2439_v53 }
 0x270   :  { %1018 = vmatprep.subr.mxu0 %v2445_v55  ;;  %1089 = vmatprep.subr.mxu1 %v2447_v56 }
 0x271   :  { %1019 = vmatpush1.msra.mxu0 %v2451_v57  ;;  %1090 = vmatpush1.msra.mxu1 %v2453_v58 }
 0x272   :  { %1020 = vmatprep.subr.mxu0 %v3414_v6  ;;  %1091 = vmatprep.subr.mxu1 %v3415_v11 }
 0x273   :  { %1021 = vmatpush1.msra.mxu0 %v3416_v36  ;;  %1092 = vmatpush1.msra.mxu1 %v3441_v12 }
 0x274   :  { %1022 = vmatprep.subr.mxu0 %v3442_v13  ;;  %1093 = vmatprep.subr.mxu1 %v3443_v14 }
 0x275   :  { %1023 = vmatpush1.msra.mxu0 %v3444_v15  ;;  %1094 = vmatpush1.msra.mxu1 %v3445_v16 }
 0x276   :  { %1024 = vmatprep.subr.mxu0 %v3446_v17  ;;  %1095 = vmatprep.subr.mxu1 %v3447_v19 }
 0x277   :  { %1025 = vmatpush1.msra.mxu0 %v3448_v20  ;;  %1096 = vmatpush1.msra.mxu1 %v3449_v21 }
 0x278   :  { %1026 = vmatprep.subr.mxu0 %v3450_v22  ;;  %1097 = vmatprep.subr.mxu1 %v3451_v23 }
 0x279   :  { %1027 = vmatpush1.msra.mxu0 %v3452_v24  ;;  %1098 = vmatpush1.msra.mxu1 %v3453_v25 }
 0x27a   :  { %1028 = vmatprep.subr.mxu0 %v3454_v26  ;;  %1099 = vmatprep.subr.mxu1 %v3455_v28 }
 0x27b   :  { %1029 = vmatpush1.msra.mxu0 %v3456_v29  ;;  %1062 = vmatprep.mubr.f32.mxu0 %v3457_v30 }
 0x27c   :  { %1100 = vmatpush1.msra.mxu1 %v3458_v31  ;;  %1133 = vmatprep.mubr.f32.mxu1 %v3457_v30 }
 0x27d   :  { %1175 = vmatprep.subr.mxu0 %v2830_v32  ;;  %1246 = vmatprep.subr.mxu1 %v2833_v33 }
 0x31c   :  { %v887_v34 = vpop.f32.mrf.mxu0  ;;  %v958_v42 = vpop.f32.mrf.mxu1 }
 0x31d   :  { %v963_v37 = vadd.f32 %v887_v34, %v3461_v35  ;;  %v965_v3 = vadd.f32 %v958_v42, %v3464_v45  ;;  %v2856_v42 = vld [vmem:[#allocation11 + $0x1c0] sm:$0xff]  ;;  %v2871_v45 = vld [vmem:[#allocation11 + $0x1b0] sm:$0xff] }
 0x31e   :  { %v889_v38 = vpop.f32.mrf.mxu0  ;;  %v960_v54 = vpop.f32.mrf.mxu1 }
 0x31f   :  { %v1921_v39 = vmul.f32 -1.442695, %v963_v37  ;;  %v964_v41 = vadd.f32 %v889_v38, %v3462_v40  ;;  %v966_v5 = vadd.f32 %v960_v54, %v3463_v59  ;;  %v2847_v40 = vld [vmem:[#allocation11 + $0x1f0] sm:$0xff]  ;;  %v2862_v54 = vld [vmem:[#allocation11 + $0x1a8] sm:$0xff]  ;;  %v2865_v59 = vld [vmem:[#allocation11 + $0x1b8] sm:$0xff] }
 0x321   :  { %1981 = vpow2.f32 %v1921_v39  ;;  %v1922_v8 = vmul.f32 -1.442695, %v964_v41  ;;  %v1923_v2 = vmul.f32 -1.442695, %v966_v5  ;;  %v2844_v39 = vld [vmem:[#allocation11 + $0x1e0] sm:$0xff]  ;;  %v2853_v41 = vld [vmem:[#allocation11 + $0x1d8] sm:$0xff] }
 0x322   :  { %v2868_v5 = vld [vmem:[#allocation11 + $0x1a0] sm:$0xff] }
 0x323   :  { %1983 = vpow2.f32 %v1922_v8  ;;  %v2859_v8 = vld [vmem:[#allocation11 + $0x1d0] sm:$0xff] }
 0x324   :  { %1985 = vtanh.f32 %v965_v3  ;;  %v2874_v3 = vld [vmem:[#allocation11 + $0x188] sm:$0xff] }
 0x325   :  { %1987 = vpow2.f32 %v1923_v2  ;;  %v2877_v2 = vld [vmem:[#allocation11 + $0x198] sm:$0xff] }
 0x32e   :  { %v1982_v60 = vpop.eup %1981 }
 0x32f   :  { %v970_v63 = vadd.f32 1.0, %v1982_v60  ;;  %v2880_v60 = vld [vmem:[#allocation11 + $0x180] sm:$0xff] }
 0x330   :  { %v1984_v1 = vpop.eup %1983 }
 0x331   :  { %1989 = vrcp.f32 %v970_v63  ;;  %v976_v4 = vadd.f32 1.0, %v1984_v1  ;;  %v1986_v62 = vpop.eup %1985  ;;  %v2883_v63 = vld [vmem:[#allocation11 + $0x190] sm:$0xff]  ;;  %v2886_v1 = vld [vmem:[#allocation11 + $0x168] sm:$0xff] }
 0x332   :  { %v1988_v0 = vpop.eup %1987 }
 0x333   :  { %1991 = vrcp.f32 %v976_v4  ;;  %v983_v9 = vadd.f32 1.0, %v1988_v0  ;;  %v2889_v4 = vld [vmem:[#allocation11 + $0x178] sm:$0xff]  ;;  %v2895_v0 = vld [vmem:[#allocation11 + $0x170] sm:$0xff] }
 0x335   :  { %1993 = vrcp.f32 %v983_v9  ;;  %v2907_v9 = vld [vmem:[#allocation11 + $0x150] sm:$0xff] }
 0x336   :  { %3466 = vst [vmem:[#allocation18_spill] sm:$0xff] %v2907_v9 }
 0x33e   :  { %v1990_v7 = vpop.eup %1989 }
 0x33f   :  { %v987_v61 = vmul.f32 %v1990_v7, %v1986_v62  ;;  %v2892_v62 = vld [vmem:[#allocation11 + $0x160] sm:$0xff]  ;;  %v2898_v7 = vld [vmem:[#allocation11 + $0x148] sm:$0xff] }
 0x340   :  { %v1992_v10 = vpop.eup %1991 }
 0x341   :  { %v986_v27 = vmul.f32 %v1992_v10, %v2763_v18  ;;  %v2850_v18 = vld [vmem:[#allocation11 + $0x1c8] sm:$0xff]  ;;  %v2904_v10 = vld [vmem:[#allocation11 + $0x140] sm:$0xff] }
 0x342   :  { %v1994_v35 = vpop.eup %1993  ;;  %3465 = vst [vmem:[#allocation22_spill] sm:$0xff] %v2904_v10 }
 0x343   :  { %v2841_v34 = vadd.f32 %v987_v61, %v986_v27  ;;  %v2901_v61 = vld [vmem:[#allocation11 + $0x158] sm:$0xff]  ;;  %v2910_v27 = vld [vmem:[#allocation11 + $0x128] sm:$0xff] }
 0x345   :  { %1995 = vtanh.f32 %v2841_v34 }
 0x352   :  { %v1996_v37 = vpop.eup %1995 }
 0x353   :  { %v990_v38 = vmul.f32 %v1996_v37, %v1994_v35  ;;  %v2913_v35 = vld [vmem:[#allocation11 + $0x138] sm:$0xff]  ;;  %v2916_v37 = vld [vmem:[#allocation11 + $0x120] sm:$0xff] }
 0x355   :  { %992 = vst [vmem:[#allocation13 + $0x10] sm:$0xff] %v990_v38  ;;  %1063 = vmatmul.mubr.f32.vlgmr.msra.gmra.mxu0 %v990_v38  ;;  %1134 = vmatmul.mubr.f32.vlgmr.msra.gmra.mxu1 %v990_v38  ;;  %v2919_v38 = vld [vmem:[#allocation11 + $0x130] sm:$0xff] }
 0x356   :  { %1176 = vmatpush1.msra.mxu0 %v2844_v39  ;;  %1247 = vmatpush1.msra.mxu1 %v2847_v40 }
 0x357   :  { %1177 = vmatprep.subr.mxu0 %v2850_v18  ;;  %1248 = vmatprep.subr.mxu1 %v2853_v41 }
 0x358   :  { %1178 = vmatpush1.msra.mxu0 %v2856_v42  ;;  %1249 = vmatpush1.msra.mxu1 %v2859_v8 }
 0x359   :  { %1179 = vmatprep.subr.mxu0 %v2862_v54  ;;  %1250 = vmatprep.subr.mxu1 %v2865_v59 }
 0x35a   :  { %1180 = vmatpush1.msra.mxu0 %v2868_v5  ;;  %1251 = vmatpush1.msra.mxu1 %v2871_v45 }
 0x35b   :  { %1181 = vmatprep.subr.mxu0 %v2874_v3  ;;  %1252 = vmatprep.subr.mxu1 %v2877_v2 }
 0x35c   :  { %1182 = vmatpush1.msra.mxu0 %v2880_v60  ;;  %1253 = vmatpush1.msra.mxu1 %v2883_v63 }
 0x35d   :  { %1183 = vmatprep.subr.mxu0 %v2886_v1  ;;  %1254 = vmatprep.subr.mxu1 %v2889_v4 }
 0x35e   :  { %1184 = vmatpush1.msra.mxu0 %v2892_v62  ;;  %1255 = vmatpush1.msra.mxu1 %v2895_v0 }
 0x35f   :  { %1185 = vmatprep.subr.mxu0 %v2898_v7  ;;  %1256 = vmatprep.subr.mxu1 %v2901_v61 }
 0x360   :  { %1186 = vmatpush1.msra.mxu0 %v2904_v10  ;;  %1257 = vmatpush1.msra.mxu1 %v2907_v9  ;;  %v2922_v10 = vld [vmem:[#allocation11 + $0x108] sm:$0xff]  ;;  %v2925_v9 = vld [vmem:[#allocation11 + $0x118] sm:$0xff] }
 0x361   :  { %1187 = vmatprep.subr.mxu0 %v2910_v27  ;;  %1258 = vmatprep.subr.mxu1 %v2913_v35 }
 0x362   :  { %1188 = vmatpush1.msra.mxu0 %v2916_v37  ;;  %1259 = vmatpush1.msra.mxu1 %v2919_v38 }
 0x363   :  { %1189 = vmatprep.subr.mxu0 %v2922_v10  ;;  %1260 = vmatprep.subr.mxu1 %v2925_v9 }
 0x364   :  { %1190 = vmatpush1.msra.mxu0 %v2409_v43  ;;  %1261 = vmatpush1.msra.mxu1 %v2411_v44  ;;  %v3467_v44 = vld [vmem:[#allocation48_spill] sm:$0xff] }
 0x365   :  { %1191 = vmatprep.subr.mxu0 %v2417_v46  ;;  %1262 = vmatprep.subr.mxu1 %v2419_v47 }
 0x366   :  { %1192 = vmatpush1.msra.mxu0 %v2423_v48  ;;  %1263 = vmatpush1.msra.mxu1 %v2425_v49  ;;  %v3468_v49 = vld [vmem:[#allocation50_spill] sm:$0xff] }
 0x367   :  { %1193 = vmatprep.subr.mxu0 %v2429_v50  ;;  %1264 = vmatprep.subr.mxu1 %v2431_v51 }
 0x368   :  { %1194 = vmatpush1.msra.mxu0 %v2437_v52  ;;  %1265 = vmatpush1.msra.mxu1 %v2439_v53 }
 0x369   :  { %1195 = vmatprep.subr.mxu0 %v2445_v55  ;;  %1266 = vmatprep.subr.mxu1 %v2447_v56  ;;  %v3469_v55 = vld [vmem:[#allocation51_spill] sm:$0xff] }
 0x36a   :  { %1196 = vmatpush1.msra.mxu0 %v2451_v57  ;;  %1267 = vmatpush1.msra.mxu1 %v2453_v58  ;;  %v3470_v57 = vld [vmem:[#allocation49_spill] sm:$0xff] }
 0x36b   :  { %1197 = vmatprep.subr.mxu0 %v3414_v6  ;;  %1268 = vmatprep.subr.mxu1 %v3415_v11 }
 0x36c   :  { %1198 = vmatpush1.msra.mxu0 %v3416_v36  ;;  %1269 = vmatpush1.msra.mxu1 %v3441_v12 }
 0x36d   :  { %1199 = vmatprep.subr.mxu0 %v3442_v13  ;;  %1270 = vmatprep.subr.mxu1 %v3443_v14 }
 0x36e   :  { %1200 = vmatpush1.msra.mxu0 %v3444_v15  ;;  %1271 = vmatpush1.msra.mxu1 %v3445_v16 }
 0x36f   :  { %1201 = vmatprep.subr.mxu0 %v3446_v17  ;;  %1272 = vmatprep.subr.mxu1 %v3447_v19 }
 0x370   :  { %1202 = vmatpush1.msra.mxu0 %v3448_v20  ;;  %1273 = vmatpush1.msra.mxu1 %v3449_v21 }
 0x371   :  { %1203 = vmatprep.subr.mxu0 %v3450_v22  ;;  %1274 = vmatprep.subr.mxu1 %v3451_v23 }
 0x372   :  { %1204 = vmatpush1.msra.mxu0 %v3452_v24  ;;  %1275 = vmatpush1.msra.mxu1 %v3453_v25 }
 0x373   :  { %1205 = vmatprep.subr.mxu0 %v3454_v26  ;;  %1276 = vmatprep.subr.mxu1 %v3455_v28  ;;  %v3471_v26 = vld [vmem:[#allocation22_spill] sm:$0xff] }
 0x374   :  { %1206 = vmatpush1.msra.mxu0 %v3456_v29  ;;  %1239 = vmatprep.mubr.f32.mxu0 %v3457_v30  ;;  %v3472_v28 = vld [vmem:[#allocation18_spill] sm:$0xff] }
 0x375   :  { %1277 = vmatpush1.msra.mxu1 %v3458_v31  ;;  %1310 = vmatprep.mubr.f32.mxu1 %v3457_v30  ;;  %v3002_v29 = vld [vmem:[#allocation11 + $0x100] sm:$0xff]  ;;  %v3005_v31 = vld [vmem:[#allocation11 + $0x110] sm:$0xff] }
 0x376   :  { %1352 = vmatprep.subr.mxu0 %v2830_v32  ;;  %1423 = vmatprep.subr.mxu1 %v2833_v33 }
 0x415   :  { %v1064_v43 = vpop.f32.mrf.mxu0  ;;  %v1135_v51 = vpop.f32.mrf.mxu1 }
 0x416   :  { %v1140_v46 = vadd.f32 %v1064_v43, %v3467_v44  ;;  %v1142_v58 = vadd.f32 %v1135_v51, %v3470_v57  ;;  %v3011_v43 = vld [vmem:[#allocation11 + $0xf8] sm:$0xff]  ;;  %v3014_v44 = vld [vmem:[#allocation11 + $0xe0] sm:$0xff]  ;;  %v3032_v51 = vld [vmem:[#allocation11 + $0xa8] sm:$0xff] }
 0x417   :  { %v1066_v47 = vpop.f32.mrf.mxu0  ;;  %v1137_v53 = vpop.f32.mrf.mxu1  ;;  %v3047_v57 = vld [vmem:[#allocation11 + $0x98] sm:$0xff] }
 0x418   :  { %v1924_v48 = vmul.f32 -1.442695, %v1140_v46  ;;  %v1141_v50 = vadd.f32 %v1066_v47, %v3468_v49  ;;  %v1143_v56 = vadd.f32 %v1137_v53, %v3469_v55  ;;  %v3017_v46 = vld [vmem:[#allocation11 + $0xf0] sm:$0xff]  ;;  %v3020_v47 = vld [vmem:[#allocation11 + $0xc8] sm:$0xff]  ;;  %v3026_v49 = vld [vmem:[#allocation11 + $0xc0] sm:$0xff] }
 0x419   :  { %v3038_v53 = vld [vmem:[#allocation11 + $0xa0] sm:$0xff]  ;;  %v3041_v55 = vld [vmem:[#allocation11 + $0xb0] sm:$0xff] }
 0x41a   :  { %1997 = vpow2.f32 %v1924_v48  ;;  %v1925_v52 = vmul.f32 -1.442695, %v1141_v50  ;;  %v1926_v6 = vmul.f32 -1.442695, %v1143_v56  ;;  %v3023_v48 = vld [vmem:[#allocation11 + $0xd8] sm:$0xff]  ;;  %v3029_v50 = vld [vmem:[#allocation11 + $0xd0] sm:$0xff] }
 0x41b   :  { %v3044_v56 = vld [vmem:[#allocation11 + $0x88] sm:$0xff] }
 0x41c   :  { %1999 = vpow2.f32 %v1925_v52  ;;  %v3035_v52 = vld [vmem:[#allocation11 + $0xb8] sm:$0xff] }
 0x41d   :  { %2001 = vtanh.f32 %v1142_v58  ;;  %v3050_v58 = vld [vmem:[#allocation11 + $0x80] sm:$0xff] }
 0x41e   :  { %2003 = vpow2.f32 %v1926_v6  ;;  %v3053_v6 = vld [vmem:[#allocation11 + $0x90] sm:$0xff] }
 0x41f   :  { %3473 = vst [vmem:[#allocation19_spill] sm:$0xff] %v3053_v6 }
 0x427   :  { %v1998_v11 = vpop.eup %1997 }
 0x428   :  { %v1147_v36 = vadd.f32 1.0, %v1998_v11  ;;  %v3056_v11 = vld [vmem:[#allocation11 + $0x68] sm:$0xff] }
 0x429   :  { %v2000_v12 = vpop.eup %1999  ;;  %3474 = vst [vmem:[#allocation40_spill] sm:$0xff] %v3056_v11 }
 0x42a   :  { %2005 = vrcp.f32 %v1147_v36  ;;  %v1153_v13 = vadd.f32 1.0, %v2000_v12  ;;  %v2002_v14 = vpop.eup %2001  ;;  %v3059_v36 = vld [vmem:[#allocation11 + $0x78] sm:$0xff]  ;;  %v3062_v12 = vld [vmem:[#allocation11 + $0x60] sm:$0xff] }
 0x42b   :  { %v2004_v15 = vpop.eup %2003  ;;  %3475 = vst [vmem:[#allocation42_spill] sm:$0xff] %v3059_v36  ;;  %3476 = vst [vmem:[#allocation43_spill] sm:$0xff] %v3062_v12 }
 0x42c   :  { %2007 = vrcp.f32 %v1153_v13  ;;  %v1160_v20 = vadd.f32 1.0, %v2004_v15  ;;  %v3065_v13 = vld [vmem:[#allocation11 + $0x70] sm:$0xff]  ;;  %v3071_v15 = vld [vmem:[#allocation11 + $0x58] sm:$0xff] }
 0x42d   :  { %3477 = vst [vmem:[#allocation41_spill] sm:$0xff] %v3065_v13  ;;  %3479 = vst [vmem:[#allocation24_spill] sm:$0xff] %v3071_v15 }
 0x42e   :  { %2009 = vrcp.f32 %v1160_v20  ;;  %v3083_v20 = vld [vmem:[#allocation11 + $0x38] sm:$0xff] }
 0x42f   :  { %3483 = vst [vmem:[#allocation28_spill] sm:$0xff] %v3083_v20 }
 0x437   :  { %v2006_v16 = vpop.eup %2005 }
 0x438   :  { %v1164_v17 = vmul.f32 %v2006_v16, %v2002_v14  ;;  %v3068_v14 = vld [vmem:[#allocation11 + $0x48] sm:$0xff]  ;;  %v3074_v16 = vld [vmem:[#allocation11 + $0x40] sm:$0xff] }
 0x439   :  { %v2008_v19 = vpop.eup %2007  ;;  %3478 = vst [vmem:[#allocation23_spill] sm:$0xff] %v3068_v14  ;;  %3480 = vst [vmem:[#allocation25_spill] sm:$0xff] %v3074_v16 }
 0x43a   :  { %v1163_v21 = vmul.f32 %v2008_v19, %v2841_v34  ;;  %v3008_v34 = vld [vmem:[#allocation11 + $0xe8] sm:$0xff] }
 0x43b   :  { %v2010_v23 = vpop.eup %2009  ;;  %v3080_v19 = vld [vmem:[#allocation11 + $0x28] sm:$0xff] }
 0x43c   :  { %v2971_v22 = vadd.f32 %v1164_v17, %v1163_v21  ;;  %v3077_v17 = vld [vmem:[#allocation11 + $0x50] sm:$0xff]  ;;  %3482 = vst [vmem:[#allocation27_spill] sm:$0xff] %v3080_v19  ;;  %v3086_v21 = vld [vmem:[#allocation11 + $0x20] sm:$0xff] }
 0x43d   :  { %3481 = vst [vmem:[#allocation26_spill] sm:$0xff] %v3077_v17  ;;  %3484 = vst [vmem:[#allocation29_spill] sm:$0xff] %v3086_v21 }
 0x43e   :  { %2011 = vtanh.f32 %v2971_v22 }
 0x44b   :  { %v2012_v24 = vpop.eup %2011 }
 0x44c   :  { %v1167_v25 = vmul.f32 %v2012_v24, %v2010_v23  ;;  %v3089_v23 = vld [vmem:[#allocation11 + $0x30] sm:$0xff]  ;;  %v3092_v24 = vld [vmem:[#allocation11 + $0x8] sm:$0xff] }
 0x44d   :  { %3485 = vst [vmem:[#allocation30_spill] sm:$0xff] %v3089_v23  ;;  %3486 = vst [vmem:[#allocation31_spill] sm:$0xff] %v3092_v24 }
 0x44e   :  { %1169 = vst [vmem:[#allocation13 + $0x18] sm:$0xff] %v1167_v25  ;;  %1240 = vmatmul.mubr.f32.vlgmr.msra.gmra.mxu0 %v1167_v25  ;;  %1311 = vmatmul.mubr.f32.vlgmr.msra.gmra.mxu1 %v1167_v25  ;;  %v3095_v25 = vld [vmem:[#allocation11 + $0x18] sm:$0xff] }
 0x44f   :  { %1353 = vmatpush1.msra.mxu0 %v2844_v39  ;;  %1424 = vmatpush1.msra.mxu1 %v2847_v40  ;;  %3487 = vst [vmem:[#allocation32_spill] sm:$0xff] %v3095_v25 }
 0x450   :  { %1354 = vmatprep.subr.mxu0 %v2850_v18  ;;  %1425 = vmatprep.subr.mxu1 %v2853_v41 }
 0x451   :  { %1355 = vmatpush1.msra.mxu0 %v2856_v42  ;;  %1426 = vmatpush1.msra.mxu1 %v2859_v8 }
 0x452   :  { %1356 = vmatprep.subr.mxu0 %v2862_v54  ;;  %1427 = vmatprep.subr.mxu1 %v2865_v59 }
 0x453   :  { %1357 = vmatpush1.msra.mxu0 %v2868_v5  ;;  %1428 = vmatpush1.msra.mxu1 %v2871_v45 }
 0x454   :  { %1358 = vmatprep.subr.mxu0 %v2874_v3  ;;  %1429 = vmatprep.subr.mxu1 %v2877_v2 }
 0x455   :  { %1359 = vmatpush1.msra.mxu0 %v2880_v60  ;;  %1430 = vmatpush1.msra.mxu1 %v2883_v63 }
 0x456   :  { %1360 = vmatprep.subr.mxu0 %v2886_v1  ;;  %1431 = vmatprep.subr.mxu1 %v2889_v4 }
 0x457   :  { %1361 = vmatpush1.msra.mxu0 %v2892_v62  ;;  %1432 = vmatpush1.msra.mxu1 %v2895_v0 }
 0x458   :  { %1362 = vmatprep.subr.mxu0 %v2898_v7  ;;  %1433 = vmatprep.subr.mxu1 %v2901_v61 }
 0x459   :  { %1363 = vmatpush1.msra.mxu0 %v3471_v26  ;;  %1434 = vmatpush1.msra.mxu1 %v3472_v28 }
 0x45a   :  { %1364 = vmatprep.subr.mxu0 %v2910_v27  ;;  %1435 = vmatprep.subr.mxu1 %v2913_v35 }
 0x45b   :  { %1365 = vmatpush1.msra.mxu0 %v2916_v37  ;;  %1436 = vmatpush1.msra.mxu1 %v2919_v38 }
 0x45c   :  { %1366 = vmatprep.subr.mxu0 %v2922_v10  ;;  %1437 = vmatprep.subr.mxu1 %v2925_v9 }
 0x45d   :  { %1367 = vmatpush1.msra.mxu0 %v3002_v29  ;;  %1438 = vmatpush1.msra.mxu1 %v3005_v31 }
 0x45e   :  { %1368 = vmatprep.subr.mxu0 %v3008_v34  ;;  %1439 = vmatprep.subr.mxu1 %v3011_v43 }
 0x45f   :  { %1369 = vmatpush1.msra.mxu0 %v3014_v44  ;;  %1440 = vmatpush1.msra.mxu1 %v3017_v46 }
 0x460   :  { %1370 = vmatprep.subr.mxu0 %v3020_v47  ;;  %1441 = vmatprep.subr.mxu1 %v3023_v48 }
 0x461   :  { %1371 = vmatpush1.msra.mxu0 %v3026_v49  ;;  %1442 = vmatpush1.msra.mxu1 %v3029_v50 }
 0x462   :  { %1372 = vmatprep.subr.mxu0 %v3032_v51  ;;  %1443 = vmatprep.subr.mxu1 %v3035_v52 }
 0x463   :  { %1373 = vmatpush1.msra.mxu0 %v3038_v53  ;;  %1444 = vmatpush1.msra.mxu1 %v3041_v55 }
 0x464   :  { %1374 = vmatprep.subr.mxu0 %v3044_v56  ;;  %1445 = vmatprep.subr.mxu1 %v3047_v57 }
 0x465   :  { %1375 = vmatpush1.msra.mxu0 %v3050_v58  ;;  %1446 = vmatpush1.msra.mxu1 %v3053_v6 }
 0x466   :  { %1376 = vmatprep.subr.mxu0 %v3056_v11  ;;  %1447 = vmatprep.subr.mxu1 %v3059_v36  ;;  %v3493_v36 = vld [vmem:[#allocation53_spill] sm:$0xff] }
 0x467   :  { %1377 = vmatpush1.msra.mxu0 %v3062_v12  ;;  %1448 = vmatpush1.msra.mxu1 %v3065_v13  ;;  %v3492_v12 = vld [vmem:[#allocation55_spill] sm:$0xff] }
 0x468   :  { %1378 = vmatprep.subr.mxu0 %v3068_v14  ;;  %1449 = vmatprep.subr.mxu1 %v3071_v15 }
 0x469   :  { %1379 = vmatpush1.msra.mxu0 %v3074_v16  ;;  %1450 = vmatpush1.msra.mxu1 %v3077_v17  ;;  %v3491_v16 = vld [vmem:[#allocation54_spill] sm:$0xff] }
 0x46a   :  { %1380 = vmatprep.subr.mxu0 %v3080_v19  ;;  %1451 = vmatprep.subr.mxu1 %v3083_v20  ;;  %v3098_v19 = vld [vmem:[#allocation11] sm:$0xff]  ;;  %v3102_v20 = vld [vmem:[#allocation11 + $0x10] sm:$0xff] }
 0x46b   :  { %1381 = vmatpush1.msra.mxu0 %v3086_v21  ;;  %1452 = vmatpush1.msra.mxu1 %v3089_v23  ;;  %3488 = vst [vmem:[#allocation33_spill] sm:$0xff] %v3098_v19  ;;  %3489 = vst [vmem:[#allocation34_spill] sm:$0xff] %v3102_v20  ;;  %v3490_v23 = vld [vmem:[#allocation52_spill] sm:$0xff] }
 0x46c   :  { %1382 = vmatprep.subr.mxu0 %v3092_v24  ;;  %1453 = vmatprep.subr.mxu1 %v3095_v25 }
 0x46d   :  { %1383 = vmatpush1.msra.mxu0 %v3098_v19  ;;  %1416 = vmatprep.mubr.f32.mxu0 %v3457_v30 }
 0x46e   :  { %1454 = vmatpush1.msra.mxu1 %v3102_v20  ;;  %1487 = vmatprep.mubr.f32.mxu1 %v3457_v30 }
 0x46f   :  { %1529 = vmatprep.subr.mxu0 %v2830_v32  ;;  %1600 = vmatprep.subr.mxu1 %v2833_v33 }
 0x50e   :  { %v1241_v24 = vpop.f32.mrf.mxu0  ;;  %v1312_v19 = vpop.f32.mrf.mxu1 }
 0x50f   :  { %v1317_v21 = vadd.f32 %v1241_v24, %v3490_v23  ;;  %v1319_v30 = vadd.f32 %v1312_v19, %v3493_v36  ;;  %v3499_v19 = vld [vmem:[#allocation23_spill] sm:$0xff] }
 0x510   :  { %v1243_v25 = vpop.f32.mrf.mxu0  ;;  %v1314_v13 = vpop.f32.mrf.mxu1 }
 0x511   :  { %v1927_v17 = vmul.f32 -1.442695, %v1317_v21  ;;  %v1318_v15 = vadd.f32 %v1243_v25, %v3491_v16  ;;  %v1320_v20 = vadd.f32 %v1314_v13, %v3492_v12  ;;  %v3498_v13 = vld [vmem:[#allocation41_spill] sm:$0xff] }
 0x513   :  { %2013 = vpow2.f32 %v1927_v17  ;;  %v1928_v14 = vmul.f32 -1.442695, %v1318_v15  ;;  %v1929_v11 = vmul.f32 -1.442695, %v1320_v20  ;;  %v3500_v20 = vld [vmem:[#allocation24_spill] sm:$0xff] }
 0x515   :  { %2015 = vpow2.f32 %v1928_v14 }
 0x516   :  { %2017 = vtanh.f32 %v1319_v30 }
 0x517   :  { %2019 = vpow2.f32 %v1929_v11  ;;  %v3497_v11 = vld [vmem:[#allocation43_spill] sm:$0xff] }
 0x520   :  { %v2014_v32 = vpop.eup %2013 }
 0x521   :  { %v1324_v6 = vadd.f32 1.0, %v2014_v32 }
 0x522   :  { %v2016_v33 = vpop.eup %2015 }
 0x523   :  { %2021 = vrcp.f32 %v1324_v6  ;;  %v1330_v23 = vadd.f32 1.0, %v2016_v33  ;;  %v2018_v21 = vpop.eup %2017  ;;  %v3494_v33 = vld [vmem:[#allocation19_spill] sm:$0xff]  ;;  %v3496_v6 = vld [vmem:[#allocation42_spill] sm:$0xff] }
 0x524   :  { %v2020_v16 = vpop.eup %2019 }
 0x525   :  { %2023 = vrcp.f32 %v1330_v23  ;;  %v1337_v14 = vadd.f32 1.0, %v2020_v16  ;;  %v3501_v23 = vld [vmem:[#allocation25_spill] sm:$0xff]  ;;  %v3503_v16 = vld [vmem:[#allocation27_spill] sm:$0xff] }
 0x527   :  { %2025 = vrcp.f32 %v1337_v14  ;;  %v3507_v14 = vld [vmem:[#allocation31_spill] sm:$0xff] }
 0x530   :  { %v2022_v17 = vpop.eup %2021 }
 0x531   :  { %v1341_v24 = vmul.f32 %v2022_v17, %v2018_v21  ;;  %v3502_v21 = vld [vmem:[#allocation26_spill] sm:$0xff]  ;;  %v3504_v17 = vld [vmem:[#allocation28_spill] sm:$0xff] }
 0x532   :  { %v2024_v15 = vpop.eup %2023 }
 0x533   :  { %v1340_v25 = vmul.f32 %v2024_v15, %v2971_v22  ;;  %v3495_v22 = vld [vmem:[#allocation40_spill] sm:$0xff]  ;;  %v3506_v15 = vld [vmem:[#allocation30_spill] sm:$0xff] }
 0x534   :  { %v2026_v32 = vpop.eup %2025 }
 0x535   :  { %v3113_v12 = vadd.f32 %v1341_v24, %v1340_v25  ;;  %v3505_v24 = vld [vmem:[#allocation29_spill] sm:$0xff]  ;;  %v3508_v25 = vld [vmem:[#allocation32_spill] sm:$0xff] }
 0x537   :  { %2027 = vtanh.f32 %v3113_v12 }
 0x544   :  { %v2028_v30 = vpop.eup %2027 }
 0x545   :  { %v1344_v36 = vmul.f32 %v2028_v30, %v2026_v32  ;;  %v3509_v32 = vld [vmem:[#allocation33_spill] sm:$0xff]  ;;  %v3510_v30 = vmov 0.0  }
 0x547   :  { %1346 = vst [vmem:[#allocation13 + $0x20] sm:$0xff] %v1344_v36  ;;  %1417 = vmatmul.mubr.f32.vlgmr.msra.gmra.mxu0 %v1344_v36  ;;  %1488 = vmatmul.mubr.f32.vlgmr.msra.gmra.mxu1 %v1344_v36  ;;  %v3511_v36 = vld [vmem:[#allocation34_spill] sm:$0xff] }
 0x548   :  { %1530 = vmatpush1.msra.mxu0 %v2844_v39  ;;  %1601 = vmatpush1.msra.mxu1 %v2847_v40 }
 0x549   :  { %1531 = vmatprep.subr.mxu0 %v2850_v18  ;;  %1602 = vmatprep.subr.mxu1 %v2853_v41 }
 0x54a   :  { %1532 = vmatpush1.msra.mxu0 %v2856_v42  ;;  %1603 = vmatpush1.msra.mxu1 %v2859_v8 }
 0x54b   :  { %1533 = vmatprep.subr.mxu0 %v2862_v54  ;;  %1604 = vmatprep.subr.mxu1 %v2865_v59 }
 0x54c   :  { %1534 = vmatpush1.msra.mxu0 %v2868_v5  ;;  %1605 = vmatpush1.msra.mxu1 %v2871_v45 }
 0x54d   :  { %1535 = vmatprep.subr.mxu0 %v2874_v3  ;;  %1606 = vmatprep.subr.mxu1 %v2877_v2 }
 0x54e   :  { %1536 = vmatpush1.msra.mxu0 %v2880_v60  ;;  %1607 = vmatpush1.msra.mxu1 %v2883_v63 }
 0x54f   :  { %1537 = vmatprep.subr.mxu0 %v2886_v1  ;;  %1608 = vmatprep.subr.mxu1 %v2889_v4 }
 0x550   :  { %1538 = vmatpush1.msra.mxu0 %v2892_v62  ;;  %1609 = vmatpush1.msra.mxu1 %v2895_v0 }
 0x551   :  { %1539 = vmatprep.subr.mxu0 %v2898_v7  ;;  %1610 = vmatprep.subr.mxu1 %v2901_v61 }
 0x552   :  { %1540 = vmatpush1.msra.mxu0 %v3471_v26  ;;  %1611 = vmatpush1.msra.mxu1 %v3472_v28 }
 0x553   :  { %1541 = vmatprep.subr.mxu0 %v2910_v27  ;;  %1612 = vmatprep.subr.mxu1 %v2913_v35 }
 0x554   :  { %1542 = vmatpush1.msra.mxu0 %v2916_v37  ;;  %1613 = vmatpush1.msra.mxu1 %v2919_v38 }
 0x555   :  { %1543 = vmatprep.subr.mxu0 %v2922_v10  ;;  %1614 = vmatprep.subr.mxu1 %v2925_v9 }
 0x556   :  { %1544 = vmatpush1.msra.mxu0 %v3002_v29  ;;  %1615 = vmatpush1.msra.mxu1 %v3005_v31 }
 0x557   :  { %1545 = vmatprep.subr.mxu0 %v3008_v34  ;;  %1616 = vmatprep.subr.mxu1 %v3011_v43 }
 0x558   :  { %1546 = vmatpush1.msra.mxu0 %v3014_v44  ;;  %1617 = vmatpush1.msra.mxu1 %v3017_v46 }
 0x559   :  { %1547 = vmatprep.subr.mxu0 %v3020_v47  ;;  %1618 = vmatprep.subr.mxu1 %v3023_v48 }
 0x55a   :  { %1548 = vmatpush1.msra.mxu0 %v3026_v49  ;;  %1619 = vmatpush1.msra.mxu1 %v3029_v50 }
 0x55b   :  { %1549 = vmatprep.subr.mxu0 %v3032_v51  ;;  %1620 = vmatprep.subr.mxu1 %v3035_v52 }
 0x55c   :  { %1550 = vmatpush1.msra.mxu0 %v3038_v53  ;;  %1621 = vmatpush1.msra.mxu1 %v3041_v55 }
 0x55d   :  { %1551 = vmatprep.subr.mxu0 %v3044_v56  ;;  %1622 = vmatprep.subr.mxu1 %v3047_v57 }
 0x55e   :  { %1552 = vmatpush1.msra.mxu0 %v3050_v58  ;;  %1623 = vmatpush1.msra.mxu1 %v3494_v33 }
 0x55f   :  { %1553 = vmatprep.subr.mxu0 %v3495_v22  ;;  %1624 = vmatprep.subr.mxu1 %v3496_v6  ;;  %v3517_v6 = vld [vmem:[#allocation57_spill] sm:$0xff] }
 0x560   :  { %1554 = vmatpush1.msra.mxu0 %v3497_v11  ;;  %1625 = vmatpush1.msra.mxu1 %v3498_v13  ;;  %v3516_v11 = vld [vmem:[#allocation59_spill] sm:$0xff] }
 0x561   :  { %1555 = vmatprep.subr.mxu0 %v3499_v19  ;;  %1626 = vmatprep.subr.mxu1 %v3500_v20 }
 0x562   :  { %1556 = vmatpush1.msra.mxu0 %v3501_v23  ;;  %1627 = vmatpush1.msra.mxu1 %v3502_v21  ;;  %v3512_v21 = vld [vmem:[#allocation20_spill] sm:$0xff] }
 0x563   :  { %1557 = vmatprep.subr.mxu0 %v3503_v16  ;;  %1628 = vmatprep.subr.mxu1 %v3504_v17  ;;  %v3513_v16 = vld [vmem:[#allocation21_spill] sm:$0xff] }
 0x564   :  { %1558 = vmatpush1.msra.mxu0 %v3505_v24  ;;  %1629 = vmatpush1.msra.mxu1 %v3506_v15  ;;  %v3514_v24 = vld [vmem:[#allocation56_spill] sm:$0xff] }
 0x565   :  { %1559 = vmatprep.subr.mxu0 %v3507_v14  ;;  %1630 = vmatprep.subr.mxu1 %v3508_v25  ;;  %v3515_v14 = vld [vmem:[#allocation58_spill] sm:$0xff] }
 0x566   :  { %1560 = vmatpush1.msra.mxu0 %v3509_v32  ;;  %1593 = vmatprep.mubr.f32.mxu0 %v3510_v30 }
 0x567   :  { %1631 = vmatpush1.msra.mxu1 %v3511_v36  ;;  %1664 = vmatprep.mubr.f32.mxu1 %v3510_v30 }
 0x568   :  { %1706 = vmatprep.subr.mxu0 %v3512_v21  ;;  %1777 = vmatprep.subr.mxu1 %v3513_v16 }
 0x607   :  { %v1418_v17 = vpop.f32.mrf.mxu0  ;;  %v1489_v25 = vpop.f32.mrf.mxu1 }
 0x608   :  { %v1494_v23 = vadd.f32 %v1418_v17, %v3514_v24  ;;  %v1496_v30 = vadd.f32 %v1489_v25, %v3517_v6 }
 0x609   :  { %v1420_v15 = vpop.f32.mrf.mxu0  ;;  %v1491_v13 = vpop.f32.mrf.mxu1 }
 0x60a   :  { %v1930_v20 = vmul.f32 -1.442695, %v1494_v23  ;;  %v1495_v19 = vadd.f32 %v1420_v15, %v3515_v14  ;;  %v1497_v36 = vadd.f32 %v1491_v13, %v3516_v11 }
 0x60c   :  { %2029 = vpow2.f32 %v1930_v20  ;;  %v1931_v32 = vmul.f32 -1.442695, %v1495_v19  ;;  %v1932_v22 = vmul.f32 -1.442695, %v1497_v36  ;;  %v3540_v36 = vld [vmem:[#allocation64_spill] sm:$0xff] }
 0x60e   :  { %2031 = vpow2.f32 %v1931_v32 }
 0x60f   :  { %2033 = vtanh.f32 %v1496_v30 }
 0x610   :  { %2035 = vpow2.f32 %v1932_v22 }
 0x619   :  { %v2030_v21 = vpop.eup %2029 }
 0x61a   :  { %v1501_v33 = vadd.f32 1.0, %v2030_v21 }
 0x61b   :  { %v2032_v16 = vpop.eup %2031 }
 0x61c   :  { %2037 = vrcp.f32 %v1501_v33  ;;  %v1507_v17 = vadd.f32 1.0, %v2032_v16  ;;  %v2034_v23 = vpop.eup %2033 }
 0x61d   :  { %v2036_v24 = vpop.eup %2035 }
 0x61e   :  { %2039 = vrcp.f32 %v1507_v17  ;;  %v1514_v14 = vadd.f32 1.0, %v2036_v24 }
 0x620   :  { %2041 = vrcp.f32 %v1514_v14  ;;  %v3542_v14 = vld [vmem:[#allocation67_spill] sm:$0xff] }
 0x629   :  { %v2038_v20 = vpop.eup %2037 }
 0x62a   :  { %v1518_v15 = vmul.f32 %v2038_v20, %v2034_v23  ;;  %v3541_v23 = vld [vmem:[#allocation66_spill] sm:$0xff] }
 0x62b   :  { %v2040_v19 = vpop.eup %2039 }
 0x62c   :  { %v1517_v32 = vmul.f32 %v2040_v19, %v3113_v12 }
 0x62d   :  { %v2042_v6 = vpop.eup %2041 }
 0x62e   :  { %v3187_v11 = vadd.f32 %v1518_v15, %v1517_v32 }
 0x630   :  { %2043 = vtanh.f32 %v3187_v11 }
 0x63d   :  { %v2044_v13 = vpop.eup %2043 }
 0x63e   :  { %v1521_v25 = vmul.f32 %v2044_v13, %v2042_v6 }
 0x640   :  { %1523 = vst [vmem:[#allocation13 + $0x28] sm:$0xff] %v1521_v25  ;;  %1594 = vmatmul.mubr.f32.vlgmr.msra.gmra.mxu0 %v1521_v25  ;;  %1665 = vmatmul.mubr.f32.vlgmr.msra.gmra.mxu1 %v1521_v25 }
 0x641   :  { %1707 = vmatpush1.msra.mxu0 %v2844_v39  ;;  %1778 = vmatpush1.msra.mxu1 %v2847_v40  ;;  %v3518_v39 = vld [vmem:[#allocation19_spill] sm:$0xff]  ;;  %v3519_v40 = vld [vmem:[#allocation40_spill] sm:$0xff] }
 0x642   :  { %1708 = vmatprep.subr.mxu0 %v2850_v18  ;;  %1779 = vmatprep.subr.mxu1 %v2853_v41  ;;  %v3520_v18 = vld [vmem:[#allocation42_spill] sm:$0xff]  ;;  %v3521_v41 = vld [vmem:[#allocation43_spill] sm:$0xff] }
 0x643   :  { %1709 = vmatpush1.msra.mxu0 %v2856_v42  ;;  %1780 = vmatpush1.msra.mxu1 %v2859_v8  ;;  %v3522_v42 = vld [vmem:[#allocation41_spill] sm:$0xff]  ;;  %v3523_v8 = vld [vmem:[#allocation23_spill] sm:$0xff] }
 0x644   :  { %1710 = vmatprep.subr.mxu0 %v2862_v54  ;;  %1781 = vmatprep.subr.mxu1 %v2865_v59  ;;  %v3524_v54 = vld [vmem:[#allocation24_spill] sm:$0xff]  ;;  %v3525_v59 = vld [vmem:[#allocation25_spill] sm:$0xff] }
 0x645   :  { %1711 = vmatpush1.msra.mxu0 %v2868_v5  ;;  %1782 = vmatpush1.msra.mxu1 %v2871_v45  ;;  %v3526_v5 = vld [vmem:[#allocation26_spill] sm:$0xff]  ;;  %v3527_v45 = vld [vmem:[#allocation27_spill] sm:$0xff] }
 0x646   :  { %1712 = vmatprep.subr.mxu0 %v2874_v3  ;;  %1783 = vmatprep.subr.mxu1 %v2877_v2  ;;  %v3528_v3 = vld [vmem:[#allocation28_spill] sm:$0xff]  ;;  %v3529_v2 = vld [vmem:[#allocation29_spill] sm:$0xff] }
 0x647   :  { %1713 = vmatpush1.msra.mxu0 %v2880_v60  ;;  %1784 = vmatpush1.msra.mxu1 %v2883_v63  ;;  %v3530_v60 = vld [vmem:[#allocation30_spill] sm:$0xff]  ;;  %v3531_v63 = vld [vmem:[#allocation31_spill] sm:$0xff] }
 0x648   :  { %1714 = vmatprep.subr.mxu0 %v2886_v1  ;;  %1785 = vmatprep.subr.mxu1 %v2889_v4  ;;  %v3532_v1 = vld [vmem:[#allocation32_spill] sm:$0xff]  ;;  %v3533_v4 = vld [vmem:[#allocation33_spill] sm:$0xff] }
 0x649   :  { %1715 = vmatpush1.msra.mxu0 %v2892_v62  ;;  %1786 = vmatpush1.msra.mxu1 %v2895_v0  ;;  %v3534_v62 = vmov 0.0   ;;  %v3535_v0 = vld [vmem:[#allocation34_spill] sm:$0xff] }
 0x64a   :  { %1716 = vmatprep.subr.mxu0 %v2898_v7  ;;  %1787 = vmatprep.subr.mxu1 %v2901_v61  ;;  %v3536_v61 = vld [vmem:[#allocation60_spill] sm:$0xff] }
 0x64b   :  { %1717 = vmatpush1.msra.mxu0 %v3471_v26  ;;  %1788 = vmatpush1.msra.mxu1 %v3472_v28 }
 0x64c   :  { %1718 = vmatprep.subr.mxu0 %v2910_v27  ;;  %1789 = vmatprep.subr.mxu1 %v2913_v35  ;;  %v3537_v35 = vld [vmem:[#allocation62_spill] sm:$0xff] }
 0x64d   :  { %1719 = vmatpush1.msra.mxu0 %v2916_v37  ;;  %1790 = vmatpush1.msra.mxu1 %v2919_v38 }
 0x64e   :  { %1720 = vmatprep.subr.mxu0 %v2922_v10  ;;  %1791 = vmatprep.subr.mxu1 %v2925_v9 }
 0x64f   :  { %1721 = vmatpush1.msra.mxu0 %v3002_v29  ;;  %1792 = vmatpush1.msra.mxu1 %v3005_v31  ;;  %v3538_v29 = vld [vmem:[#allocation63_spill] sm:$0xff] }
 0x650   :  { %1722 = vmatprep.subr.mxu0 %v3008_v34  ;;  %1793 = vmatprep.subr.mxu1 %v3011_v43  ;;  %v3539_v34 = vld [vmem:[#allocation61_spill] sm:$0xff] }
 0x651   :  { %1723 = vmatpush1.msra.mxu0 %v3014_v44  ;;  %1794 = vmatpush1.msra.mxu1 %v3017_v46 }
 0x652   :  { %1724 = vmatprep.subr.mxu0 %v3020_v47  ;;  %1795 = vmatprep.subr.mxu1 %v3023_v48 }
 0x653   :  { %1725 = vmatpush1.msra.mxu0 %v3026_v49  ;;  %1796 = vmatpush1.msra.mxu1 %v3029_v50 }
 0x654   :  { %1726 = vmatprep.subr.mxu0 %v3032_v51  ;;  %1797 = vmatprep.subr.mxu1 %v3035_v52 }
 0x655   :  { %1727 = vmatpush1.msra.mxu0 %v3038_v53  ;;  %1798 = vmatpush1.msra.mxu1 %v3041_v55 }
 0x656   :  { %1728 = vmatprep.subr.mxu0 %v3044_v56  ;;  %1799 = vmatprep.subr.mxu1 %v3047_v57 }
 0x657   :  { %1729 = vmatpush1.msra.mxu0 %v3050_v58  ;;  %1800 = vmatpush1.msra.mxu1 %v3518_v39 }
 0x658   :  { %1730 = vmatprep.subr.mxu0 %v3519_v40  ;;  %1801 = vmatprep.subr.mxu1 %v3520_v18 }
 0x659   :  { %1731 = vmatpush1.msra.mxu0 %v3521_v41  ;;  %1802 = vmatpush1.msra.mxu1 %v3522_v42 }
 0x65a   :  { %1732 = vmatprep.subr.mxu0 %v3523_v8  ;;  %1803 = vmatprep.subr.mxu1 %v3524_v54 }
 0x65b   :  { %1733 = vmatpush1.msra.mxu0 %v3525_v59  ;;  %1804 = vmatpush1.msra.mxu1 %v3526_v5 }
 0x65c   :  { %1734 = vmatprep.subr.mxu0 %v3527_v45  ;;  %1805 = vmatprep.subr.mxu1 %v3528_v3 }
 0x65d   :  { %1735 = vmatpush1.msra.mxu0 %v3529_v2  ;;  %1806 = vmatpush1.msra.mxu1 %v3530_v60 }
 0x65e   :  { %1736 = vmatprep.subr.mxu0 %v3531_v63  ;;  %1807 = vmatprep.subr.mxu1 %v3532_v1 }
 0x65f   :  { %1737 = vmatpush1.msra.mxu0 %v3533_v4  ;;  %1770 = vmatprep.mubr.f32.mxu0 %v3534_v62 }
 0x660   :  { %1808 = vmatpush1.msra.mxu1 %v3535_v0  ;;  %1841 = vmatprep.mubr.f32.mxu1 %v3534_v62 }
 0x700   :  { %v1595_v7 = vpop.f32.mrf.mxu0  ;;  %v1666_v38 = vpop.f32.mrf.mxu1 }
 0x701   :  { %v1671_v10 = vadd.f32 %v1595_v7, %v3536_v61  ;;  %v1673_v43 = vadd.f32 %v1666_v38, %v3539_v34 }
 0x702   :  { %v1597_v9 = vpop.f32.mrf.mxu0  ;;  %v1668_v28 = vpop.f32.mrf.mxu1 }
 0x703   :  { %v1933_v27 = vmul.f32 -1.442695, %v1671_v10  ;;  %v1672_v37 = vadd.f32 %v1597_v9, %v3537_v35  ;;  %v1674_v31 = vadd.f32 %v1668_v28, %v3538_v29 }
 0x705   :  { %2045 = vpow2.f32 %v1933_v27  ;;  %v1934_v26 = vmul.f32 -1.442695, %v1672_v37  ;;  %v1935_v44 = vmul.f32 -1.442695, %v1674_v31 }
 0x707   :  { %2047 = vpow2.f32 %v1934_v26 }
 0x708   :  { %2049 = vtanh.f32 %v1673_v43 }
 0x709   :  { %2051 = vpow2.f32 %v1935_v44 }
 0x712   :  { %v2046_v46 = vpop.eup %2045 }
 0x713   :  { %v1678_v47 = vadd.f32 1.0, %v2046_v46 }
 0x714   :  { %v2048_v48 = vpop.eup %2047 }
 0x715   :  { %2053 = vrcp.f32 %v1678_v47  ;;  %v1684_v49 = vadd.f32 1.0, %v2048_v48  ;;  %v2050_v50 = vpop.eup %2049 }
 0x716   :  { %v2052_v51 = vpop.eup %2051 }
 0x717   :  { %2055 = vrcp.f32 %v1684_v49  ;;  %v1691_v56 = vadd.f32 1.0, %v2052_v51 }
 0x719   :  { %2057 = vrcp.f32 %v1691_v56 }
 0x722   :  { %v2054_v52 = vpop.eup %2053 }
 0x723   :  { %v1695_v53 = vmul.f32 %v2054_v52, %v2050_v50 }
 0x724   :  { %v2056_v55 = vpop.eup %2055 }
 0x725   :  { %v1694_v57 = vmul.f32 %v2056_v55, %v3187_v11  ;;  %v3543_v11 = vld [vmem:[#allocation65_spill] sm:$0xff] }
 0x726   :  { %v2058_v12 = vpop.eup %2057 }
 0x727   :  { %v1696_v58 = vadd.f32 %v1695_v53, %v1694_v57 }
 0x729   :  { %2059 = vtanh.f32 %v1696_v58 }
 0x736   :  { %v2060_v33 = vpop.eup %2059 }
 0x737   :  { %v1698_v22 = vmul.f32 %v2060_v33, %v2058_v12 }
 0x739   :  { %1700 = vst [vmem:[#allocation13 + $0x30] sm:$0xff] %v1698_v22  ;;  %1771 = vmatmul.mubr.f32.vlgmr.msra.gmra.mxu0 %v1698_v22  ;;  %1842 = vmatmul.mubr.f32.vlgmr.msra.gmra.mxu1 %v1698_v22 }
 0x7f9   :  { %v1772_v30 = vpop.f32.mrf.mxu0  ;;  %v1843_v20 = vpop.f32.mrf.mxu1 }
 0x7fa   :  { %v1848_v21 = vadd.f32 %v1772_v30, %v3540_v36  ;;  %v1850_v6 = vadd.f32 %v1843_v20, %v3543_v11 }
 0x7fb   :  { %v1774_v16 = vpop.f32.mrf.mxu0  ;;  %v1845_v19 = vpop.f32.mrf.mxu1 }
 0x7fc   :  { %v1936_v17 = vmul.f32 -1.442695, %v1848_v21  ;;  %v1849_v24 = vadd.f32 %v1774_v16, %v3541_v23  ;;  %v1851_v32 = vadd.f32 %v1845_v19, %v3542_v14 }
 0x7fe   :  { %2061 = vpow2.f32 %v1936_v17  ;;  %v1937_v15 = vmul.f32 -1.442695, %v1849_v24  ;;  %v1938_v13 = vmul.f32 -1.442695, %v1851_v32 }
 0x800   :  { %2063 = vpow2.f32 %v1937_v15 }
 0x801   :  { %2065 = vtanh.f32 %v1850_v6 }
 0x802   :  { %2067 = vpow2.f32 %v1938_v13 }
 0x80b   :  { %v2062_v25 = vpop.eup %2061 }
 0x80c   :  { %v1855_v39 = vadd.f32 1.0, %v2062_v25 }
 0x80d   :  { %v2064_v40 = vpop.eup %2063 }
 0x80e   :  { %2069 = vrcp.f32 %v1855_v39  ;;  %v1861_v18 = vadd.f32 1.0, %v2064_v40  ;;  %v2066_v41 = vpop.eup %2065 }
 0x80f   :  { %v2068_v42 = vpop.eup %2067 }
 0x810   :  { %2071 = vrcp.f32 %v1861_v18  ;;  %v1868_v5 = vadd.f32 1.0, %v2068_v42 }
 0x812   :  { %2073 = vrcp.f32 %v1868_v5 }
 0x81b   :  { %v2070_v8 = vpop.eup %2069 }
 0x81c   :  { %v1872_v54 = vmul.f32 %v2070_v8, %v2066_v41 }
 0x81d   :  { %v2072_v59 = vpop.eup %2071 }
 0x81e   :  { %v1871_v45 = vmul.f32 %v2072_v59, %v1696_v58 }
 0x81f   :  { %v2074_v2 = vpop.eup %2073 }
 0x820   :  { %v1873_v3 = vadd.f32 %v1872_v54, %v1871_v45 }
 0x822   :  { %2075 = vtanh.f32 %v1873_v3 }
 0x82f   :  { %v2076_v60 = vpop.eup %2075 }
 0x830   :  { %v1875_v63 = vmul.f32 %v2076_v60, %v2074_v2 }
 0x832   :  { %1877 = vst [vmem:[#allocation13 + $0x38] sm:$0xff] %v1875_v63 }
 0x833   :  { %2232 = shalt.err (!%p2229_p10)
}
 0x834   :  { %1891 = dma.vmem_to_hbm [thread:$0]  %s1886_s3, 1024, %s3273_s4, [#allocation7], %s2253_s25, %s2253_s25, %s2254_s26  }
 0x835   :  { %2247 = dma.done.wait [#allocation7], 1024  }
 0x836   :  { %2248 = vsyncadd [#allocation7], 4294966272 }
 0x837   :  { %1895 = vsyncpa [#allocation6], 1 }
 0x838   :  { %1896 = vsyncpa [#allocation9], 1 }
 0x839   :  { %1897 = vsyncpa [#allocation12], 1 }
 0x83a   :  { %1898 = vsyncpa [#allocation7], 1 }

</bundles_post_ra>
